<compile_context>
chip_gen: v5e
topology: v5e:2x2
jax: 0.10.0
libtpu: 0.0.40
codegen_flags: <defaults>
</compile_context>

<pallas_src>
import jax
import jax.numpy as jnp
from jax.experimental import pallas as pl
from jax.experimental.pallas import tpu as pltpu

HIDDEN = 512
LEAK = 0.01  # PyTorch nn.LeakyReLU default negative_slope


def _discriminator_kernel(x_ref, w1, b1, w2, b2, w3, b3, out_ref):
    f32 = jnp.float32
    bf16 = jnp.bfloat16

    # --- layer 1: single fused matmul over zero-padded concat [s|a|g] ---
    h = (jnp.dot(x_ref[...].astype(bf16), w1[...], preferred_element_type=f32)
         + b1[...])
    h = jnp.maximum(h, LEAK * h)                       # LeakyReLU(0.01)

    # --- layer 2 ---
    h = jnp.dot(h.astype(bf16), w2[...], preferred_element_type=f32) + b2[...]
    h = jnp.maximum(h, LEAK * h)

    # --- layer 3 + sigmoid + clip ---
    logit = jnp.dot(h.astype(bf16), w3[...], preferred_element_type=f32) + b3[...]
    score = pl.reciprocal(1.0 + jnp.exp(-logit), approx=True)  # sigmoid (EUP)
    out_ref[...] = jnp.clip(score, 0.0001, 0.9999)


def discriminator_forward(states, actions, goals, params, *, tb=512):
    """Returns clipped sigmoid scores of shape (B, 1), matching the PyTorch module."""
    B = states.shape[0]
    # Single concat in the wrapper (only input_dim ~ tens of features wide).
    x = jnp.concatenate([states, actions, goals], axis=-1)
    K = x.shape[1]
    K_pad = params["w1"].shape[0]          # feature axis zero-padded to mult. of 128

    # Batch tile: multiple of 8 (sublane granularity), capped at `tb` (sweep 512/1024).
    TB = min(tb, ((B + 7) // 8) * 8)
    B_pad = ((B + TB - 1) // TB) * TB
    x = jnp.pad(x, ((0, B_pad - B), (0, K_pad - K)))   # one pad for batch + features

    grid = (B_pad // TB,)

    def w_spec(arr):
        # Full block, constant index map -> weight stays VMEM-resident across tiles.
        return pl.BlockSpec(arr.shape, lambda i: (0,) * arr.ndim)

    weights = (params["w1"], params["b1"], params["w2"], params["b2"],
               params["w3"], params["b3"])
    in_specs = [pl.BlockSpec((TB, K_pad), lambda i: (i, 0))]
    in_specs += [w_spec(a) for a in weights]

    out = pl.pallas_call(
        _discriminator_kernel,
        out_shape=jax.ShapeDtypeStruct((B_pad, 1), jnp.float32),
        grid=grid,
        in_specs=in_specs,
        out_specs=pl.BlockSpec((TB, 1), lambda i: (i, 0)),
        compiler_params=pltpu.CompilerParams(
            # Batch tiles are independent -> shard across TCs on v7x megacore.
            dimension_semantics=("parallel",)),
    )(x, *weights)
    return out[:B]  # (B, 1)


def init_params(key, state_dim, ac_dim, goal_dim):
    """PyTorch nn.Linear default init (U(-1/sqrt(fan_in), 1/sqrt(fan_in)))."""
    input_dim = state_dim + ac_dim + goal_dim
    k_pad = max(128, ((input_dim + 127) // 128) * 128)   # aligned K for layer 1

    def linear(key, fan_in, fan_out):
        kw, kb = jax.random.split(key)
        bound = 1.0 / jnp.sqrt(fan_in)
        w = jax.random.uniform(kw, (fan_in, fan_out), jnp.float32, -bound, bound)
        b = jax.random.uniform(kb, (1, fan_out), jnp.float32, -bound, bound)
        return w, b

    k1, k2, k3 = jax.random.split(key, 3)
    w1, b1 = linear(k1, input_dim, HIDDEN)
    w2, b2 = linear(k2, HIDDEN, HIDDEN)
    w3, b3 = linear(k3, HIDDEN, 1)

    bf16 = jnp.bfloat16
    # Zero-pad W1's input axis so padded x columns contribute nothing.
    w1_pad = jnp.pad(w1, ((0, k_pad - input_dim), (0, 0)))

    return dict(
        # bf16 weights for the kernel (single fused W1 block)
        w1=w1_pad.astype(bf16), b1=b1,
        w2=w2.astype(bf16), b2=b2,
        w3=w3.astype(bf16), b3=b3,
        # f32 copies for the pure-JAX reference
        w1_f32=w1, b1_f32=b1, w2_f32=w2, b2_f32=b2, w3_f32=w3, b3_f32=b3,
    )


def reference_forward(states, actions, goals, p):
    x = jnp.concatenate([states, actions, goals], axis=-1)
    h = x @ p["w1_f32"] + p["b1_f32"]
    h = jnp.where(h > 0, h, LEAK * h)
    h = h @ p["w2_f32"] + p["b2_f32"]
    h = jnp.where(h > 0, h, LEAK * h)
    logit = h @ p["w3_f32"] + p["b3_f32"]
    return jnp.clip(jax.nn.sigmoid(logit), 0.0001, 0.9999)


if __name__ == "__main__":
    state_dim, ac_dim, goal_dim = 16, 8, 16
    batch = 8

    key = jax.random.PRNGKey(0)
    kp, ks, ka, kg = jax.random.split(key, 4)
    params = init_params(kp, state_dim, ac_dim, goal_dim)

    states = jax.random.normal(ks, (batch, state_dim), jnp.float32)
    actions = jax.random.normal(ka, (batch, ac_dim), jnp.float32)
    goals = jax.random.normal(kg, (batch, goal_dim), jnp.float32)

    out = discriminator_forward(states, actions, goals, params)
    out = jax.block_until_ready(out)

    ref = reference_forward(states, actions, goals, params)
    assert out.shape == (batch, 1), out.shape
    assert bool(jnp.all(out >= 0.0001)) and bool(jnp.all(out <= 0.9999))
    # bf16 weights/activations (f32 accumulation) + approx reciprocal vs f32 ref.
    assert jnp.allclose(out, ref, atol=2e-2, rtol=2e-2), (out, ref)

    print("KERNEL_OK")
</pallas_src>

<mosaic_0001>
module attributes {stable_mosaic.version = 11 : i64} {
  func.func @_discriminator_kernel(%arg0: i32, %arg1: memref<8x128xf32, #tpu.memory_space<vmem>>, %arg2: memref<128x512xbf16, #tpu.memory_space<vmem>>, %arg3: memref<1x512xf32, #tpu.memory_space<vmem>>, %arg4: memref<512x512xbf16, #tpu.memory_space<vmem>>, %arg5: memref<1x512xf32, #tpu.memory_space<vmem>>, %arg6: memref<512x1xbf16, #tpu.memory_space<vmem>>, %arg7: memref<1x1xf32, #tpu.memory_space<vmem>>, %arg8: memref<8x1xf32, #tpu.memory_space<vmem>>) attributes {dimension_semantics = [#tpu.dimension_semantics<parallel>], iteration_bounds = array<i64: 1>, scalar_prefetch = 0 : i64, scratch_operands = 0 : i64, tpu.core_type = #tpu.core_type<tc>, window_params = [{transform_indices = @transform_0, window_bounds = array<i64: 8, 128>}, {pipeline_mode = #tpu.pipeline_mode<synchronous>, transform_indices = @transform_1, window_bounds = array<i64: 128, 512>}, {pipeline_mode = #tpu.pipeline_mode<synchronous>, transform_indices = @transform_2, window_bounds = array<i64: 1, 512>}, {pipeline_mode = #tpu.pipeline_mode<synchronous>, transform_indices = @transform_3, window_bounds = array<i64: 512, 512>}, {pipeline_mode = #tpu.pipeline_mode<synchronous>, transform_indices = @transform_4, window_bounds = array<i64: 1, 512>}, {pipeline_mode = #tpu.pipeline_mode<synchronous>, transform_indices = @transform_5, window_bounds = array<i64: 512, 1>}, {pipeline_mode = #tpu.pipeline_mode<synchronous>, transform_indices = @transform_6, window_bounds = array<i64: 1, 1>}, {transform_indices = @transform_7, window_bounds = array<i64: 8, 1>}]} {
    %c0 = arith.constant 0 : index
    %c0_0 = arith.constant 0 : index
    %0 = vector.load %arg1[%c0, %c0_0] : memref<8x128xf32, #tpu.memory_space<vmem>>, vector<8x128xf32>
    %1 = arith.truncf %0 : vector<8x128xf32> to vector<8x128xbf16>
    %c0_1 = arith.constant 0 : index
    %c0_2 = arith.constant 0 : index
    %2 = vector.load %arg2[%c0_1, %c0_2] : memref<128x512xbf16, #tpu.memory_space<vmem>>, vector<128x512xbf16>
    %cst = arith.constant dense<0.000000e+00> : vector<8x512xf32>
    %3 = tpu.matmul %1, %2, %cst {dimension_numbers = #tpu.dot_dimension_numbers<[1], [0], [0], [1], [0, 0, 1, 1], [], []>} : vector<8x128xbf16>, vector<128x512xbf16>, vector<8x512xf32> -> vector<8x512xf32>
    %c0_3 = arith.constant 0 : index
    %c0_4 = arith.constant 0 : index
    %4 = vector.load %arg3[%c0_3, %c0_4] : memref<1x512xf32, #tpu.memory_space<vmem>>, vector<1x512xf32>
    %5 = vector.broadcast %4 : vector<1x512xf32> to vector<8x512xf32>
    %6 = arith.addf %3, %5 : vector<8x512xf32>
    %cst_5 = arith.constant 0.00999999977 : f32
    %7 = vector.broadcast %cst_5 : f32 to vector<8x512xf32>
    %8 = arith.mulf %7, %6 : vector<8x512xf32>
    %9 = arith.maximumf %6, %8 : vector<8x512xf32>
    %10 = arith.truncf %9 : vector<8x512xf32> to vector<8x512xbf16>
    %c0_6 = arith.constant 0 : index
    %c0_7 = arith.constant 0 : index
    %11 = vector.load %arg4[%c0_6, %c0_7] : memref<512x512xbf16, #tpu.memory_space<vmem>>, vector<512x512xbf16>
    %cst_8 = arith.constant dense<0.000000e+00> : vector<8x512xf32>
    %12 = tpu.matmul %10, %11, %cst_8 {dimension_numbers = #tpu.dot_dimension_numbers<[1], [0], [0], [1], [0, 0, 1, 1], [], []>} : vector<8x512xbf16>, vector<512x512xbf16>, vector<8x512xf32> -> vector<8x512xf32>
    %c0_9 = arith.constant 0 : index
    %c0_10 = arith.constant 0 : index
    %13 = vector.load %arg5[%c0_9, %c0_10] : memref<1x512xf32, #tpu.memory_space<vmem>>, vector<1x512xf32>
    %14 = vector.broadcast %13 : vector<1x512xf32> to vector<8x512xf32>
    %15 = arith.addf %12, %14 : vector<8x512xf32>
    %cst_11 = arith.constant 0.00999999977 : f32
    %16 = vector.broadcast %cst_11 : f32 to vector<8x512xf32>
    %17 = arith.mulf %16, %15 : vector<8x512xf32>
    %18 = arith.maximumf %15, %17 : vector<8x512xf32>
    %19 = arith.truncf %18 : vector<8x512xf32> to vector<8x512xbf16>
    %c0_12 = arith.constant 0 : index
    %c0_13 = arith.constant 0 : index
    %20 = vector.load %arg6[%c0_12, %c0_13] : memref<512x1xbf16, #tpu.memory_space<vmem>>, vector<512x1xbf16>
    %cst_14 = arith.constant dense<0.000000e+00> : vector<8x1xf32>
    %21 = tpu.matmul %19, %20, %cst_14 {dimension_numbers = #tpu.dot_dimension_numbers<[1], [0], [0], [1], [0, 0, 1, 1], [], []>} : vector<8x512xbf16>, vector<512x1xbf16>, vector<8x1xf32> -> vector<8x1xf32>
    %c0_15 = arith.constant 0 : index
    %c0_16 = arith.constant 0 : index
    %22 = vector.load %arg7[%c0_15, %c0_16] : memref<1x1xf32, #tpu.memory_space<vmem>>, vector<1x1xf32>
    %23 = vector.broadcast %22 : vector<1x1xf32> to vector<8x1xf32>
    %24 = arith.addf %21, %23 : vector<8x1xf32>
    %cst_17 = arith.constant 0.000000e+00 : f32
    %25 = vector.broadcast %cst_17 : f32 to vector<8x1xf32>
    %26 = arith.subf %25, %24 : vector<8x1xf32>
    %27 = math.exp %26 : vector<8x1xf32>
    %cst_18 = arith.constant 1.000000e+00 : f32
    %28 = vector.broadcast %cst_18 : f32 to vector<8x1xf32>
    %29 = arith.addf %28, %27 : vector<8x1xf32>
    %30 = tpu.reciprocal %29 {approx = true} : vector<8x1xf32> -> vector<8x1xf32>
    %cst_19 = arith.constant 9.99999974E-5 : f32
    %cst_20 = arith.constant 0.999899983 : f32
    %31 = vector.broadcast %cst_19 : f32 to vector<8x1xf32>
    %32 = arith.maximumf %31, %30 : vector<8x1xf32>
    %33 = vector.broadcast %cst_20 : f32 to vector<8x1xf32>
    %34 = arith.minimumf %33, %32 : vector<8x1xf32>
    %c0_21 = arith.constant 0 : index
    %c0_22 = arith.constant 0 : index
    %35 = vector.load %arg8[%c0_21, %c0_22] : memref<8x1xf32, #tpu.memory_space<vmem>>, vector<8x1xf32>
    tpu.vector_store %arg8[%c0_21, %c0_22], %34 {strides = array<i32>} : memref<8x1xf32, #tpu.memory_space<vmem>>, vector<8x1xf32>,
    return
  }
  func.func @transform_0(%arg0: i32) -> (i32, i32) {
    %c0_i32 = arith.constant 0 : i32
    %c0_i32_0 = arith.constant 0 : i32
    return %arg0, %c0_i32 : i32, i32
  }
  func.func @transform_1(%arg0: i32) -> (i32, i32) {
    %c0_i32 = arith.constant 0 : i32
    %c0_i32_0 = arith.constant 0 : i32
    %c0_i32_1 = arith.constant 0 : i32
    return %c0_i32, %c0_i32_0 : i32, i32
  }
  func.func @transform_2(%arg0: i32) -> (i32, i32) {
    %c0_i32 = arith.constant 0 : i32
    %c0_i32_0 = arith.constant 0 : i32
    %c0_i32_1 = arith.constant 0 : i32
    return %c0_i32, %c0_i32_0 : i32, i32
  }
  func.func @transform_3(%arg0: i32) -> (i32, i32) {
    %c0_i32 = arith.constant 0 : i32
    %c0_i32_0 = arith.constant 0 : i32
    %c0_i32_1 = arith.constant 0 : i32
    return %c0_i32, %c0_i32_0 : i32, i32
  }
  func.func @transform_4(%arg0: i32) -> (i32, i32) {
    %c0_i32 = arith.constant 0 : i32
    %c0_i32_0 = arith.constant 0 : i32
    %c0_i32_1 = arith.constant 0 : i32
    return %c0_i32, %c0_i32_0 : i32, i32
  }
  func.func @transform_5(%arg0: i32) -> (i32, i32) {
    %c0_i32 = arith.constant 0 : i32
    %c0_i32_0 = arith.constant 0 : i32
    %c0_i32_1 = arith.constant 0 : i32
    return %c0_i32, %c0_i32_0 : i32, i32
  }
  func.func @transform_6(%arg0: i32) -> (i32, i32) {
    %c0_i32 = arith.constant 0 : i32
    %c0_i32_0 = arith.constant 0 : i32
    %c0_i32_1 = arith.constant 0 : i32
    return %c0_i32, %c0_i32_0 : i32, i32
  }
  func.func @transform_7(%arg0: i32) -> (i32, i32) {
    %c0_i32 = arith.constant 0 : i32
    %c0_i32_0 = arith.constant 0 : i32
    return %arg0, %c0_i32 : i32, i32
  }
}

</mosaic_0001>

<bundles_post_ra>
// kernel: tpu_custom_call.1
= control target key start
LH: loop header
LB: loop body
LE: loop exit
PB: predicated region body
PF: predicated region fallthrough
CT: control target
= control target key end

     0   :  { %s3091_s0 = inlined_call_operand.hbm [shape: f32[8,128], index: 0, kind: input, shape index: {}]   ;;  %s3092_s1 = inlined_call_operand.vmem [shape: bf16[128,512], index: 1, kind: input, shape index: {}]   ;;  %s3093_s2 = inlined_call_operand.vmem [shape: f32[1,512], index: 2, kind: input, shape index: {}]   ;;  %s3094_s3 = inlined_call_operand.hbm [shape: bf16[512,512], index: 3, kind: input, shape index: {}]   ;;  %s3095_s4 = inlined_call_operand.hbm [shape: f32[1,512], index: 4, kind: input, shape index: {}]   ;;  %s3096_s5 = inlined_call_operand.vmem [shape: bf16[512,1], index: 5, kind: input, shape index: {}]   ;;  %s3097_s6 = inlined_call_operand.<no memory space> [shape: f32[1,1], index: 6, kind: input, shape index: {}]   ;;  %s3098_s7 = inlined_call_operand.vmem [shape: f32[8,1], index: 7, kind: output, shape index: {}]  }
   0x1   :  { %v12_v0 = vstv %s3097_s6 }
   0x2   :  { %13 = vst [vmem:[#allocation2] sm:$0x1] %v12_v0 }
   0x3   :  { %14 = vsyncpa [#allocation4], 0 }
   0x4   :  { %15 = vsyncpa [#allocation6], 0  ;;  %s35_s28 = sshll.u32 %s3094_s3, 4  ;;  %s2710_s29 = smov [#allocation5]   ;;  %s36_s28 = int_to_ptr.hbm [resolvable:$true] %s35_s28 }
   0x5   :  { %s37_s30 = sshll.u32 %s2710_s29, 4  ;;  %s21_s10 = sshll.u32 %s3091_s0, 4  ;;  %s38_s30 = int_to_ptr.vmem [resolvable:$true] %s37_s30  ;;  %s22_s10 = int_to_ptr.hbm [resolvable:$true] %s21_s10 }
   0x6   :  { %s2711_s11 = smov 256   ;;  %s2712_s12 = smov 16  }
   0x7   :  { %43 = dma.hbm_to_vmem [thread:$0]  %s36_s28, 16384, %s38_s30, [#allocation6], %s2711_s11, %s2711_s11, %s2712_s12  }
   0x8   :  { %s2713_s6 = smov [#allocation3]   ;;  %s49_s16 = sshll.u32 %s3095_s4, 4  ;;  %s50_s16 = int_to_ptr.hbm [resolvable:$true] %s49_s16 }
   0x9   :  { %s23_s13 = sshll.u32 %s2713_s6, 4  ;;  %s2714_s3 = smov [#allocation7]   ;;  %s24_s13 = int_to_ptr.vmem [resolvable:$true] %s23_s13 }
   0xa   :  { %26 = dma.hbm_to_vmem [thread:$0]  %s22_s10, 128, %s24_s13, [#allocation4]  }
   0xb   :  { %s51_s17 = sshll.u32 %s2714_s3, 4  ;;  %s52_s17 = int_to_ptr.vmem [resolvable:$true] %s51_s17 }
   0xc   :  { %54 = dma.hbm_to_vmem [thread:$0]  %s50_s16, 64, %s52_s17, [#allocation6]  }
   0xd   :  { %2706 = dma.done.wait [#allocation4], 128  }
   0xe   :  { %2707 = vsyncadd [#allocation4], 4294967168 }
   0xf   :  { %2708 = dma.done.wait [#allocation6], 16448  }
  0x10   :  { %2709 = vsyncadd [#allocation6], 4294950848  ;;  %v1778_v1 = vld [vmem:[%s3092_s1 + $0xe0] sm:$0xf]  ;;  %v2462_v2 = vld [vmem:[%s3092_s1 + $0xec] sm:$0xf0] }
  0x11   :  { %v2460_v3 = vld [vmem:[%s3092_s1 + $0xe4] sm:$0xf]  ;;  %v1779_v4 = vor.u32 %v2462_v2, %v1778_v1  ;;  %v1780_v5 = vld [vmem:[%s3092_s1 + $0xf0] sm:$0xf0]  ;;  %v1786_v6 = vld [vmem:[%s3092_s1 + $0xe8] sm:$0xf] }
  0x12   :  { %v2463_v7 = vld [vmem:[%s3092_s1 + $0xf4] sm:$0xf0]  ;;  %v1783_v8 = vor.u32 %v2460_v3, %v1780_v5  ;;  %v2461_v10 = vld [vmem:[%s3092_s1 + $0xec] sm:$0xf]  ;;  %v1788_v11 = vld [vmem:[%s3092_s1 + $0xf8] sm:$0xf0] }
  0x13   :  { %v1787_v9 = vor.u32 %v2463_v7, %v1786_v6  ;;  %v1762_v12 = vld [vmem:[%s3092_s1 + $0xc0] sm:$0xf]  ;;  %275 = vmatpush.bf16.msra.mxu0 %v1779_v4  ;;  %v1791_v13 = vor.u32 %v2461_v10, %v1788_v11  ;;  %v2458_v14 = vld [vmem:[%s3092_s1 + $0xcc] sm:$0xf0]  ;;  %v2456_v15 = vld [vmem:[%s3092_s1 + $0xc4] sm:$0xf] }
  0x14   :  { %v1764_v16 = vld [vmem:[%s3092_s1 + $0xd0] sm:$0xf0]  ;;  %288 = vmatpush.bf16.msra.mxu1 %v1783_v8  ;;  %v1763_v17 = vor.u32 %v2458_v14, %v1762_v12  ;;  %v1770_v19 = vld [vmem:[%s3092_s1 + $0xc8] sm:$0xf]  ;;  %v2459_v20 = vld [vmem:[%s3092_s1 + $0xd4] sm:$0xf0] }
  0x15   :  { %301 = vmatpush.bf16.msra.mxu2 %v1787_v9  ;;  %v1767_v18 = vor.u32 %v2456_v15, %v1764_v16  ;;  %v2457_v21 = vld [vmem:[%s3092_s1 + $0xcc] sm:$0xf]  ;;  %314 = vmatpush.bf16.msra.mxu3 %v1791_v13  ;;  %v1771_v22 = vor.u32 %v2459_v20, %v1770_v19  ;;  %v1772_v23 = vld [vmem:[%s3092_s1 + $0xd8] sm:$0xf0]  ;;  %v1746_v24 = vld [vmem:[%s3092_s1 + $0xa0] sm:$0xf] }
  0x16   :  { %v2454_v25 = vld [vmem:[%s3092_s1 + $0xac] sm:$0xf0]  ;;  %v1775_v26 = vor.u32 %v2457_v21, %v1772_v23  ;;  %v2452_v27 = vld [vmem:[%s3092_s1 + $0xa4] sm:$0xf]  ;;  %v1748_v28 = vld [vmem:[%s3092_s1 + $0xb0] sm:$0xf0] }
  0x17   :  { %v1754_v29 = vld [vmem:[%s3092_s1 + $0xa8] sm:$0xf]  ;;  %276 = vmatpush.bf16.msra.mxu0 %v1763_v17  ;;  %v1747_v30 = vor.u32 %v2454_v25, %v1746_v24  ;;  %v2455_v31 = vld [vmem:[%s3092_s1 + $0xb4] sm:$0xf0]  ;;  %v2453_v32 = vld [vmem:[%s3092_s1 + $0xac] sm:$0xf]  ;;  %v1751_v34 = vor.u32 %v2452_v27, %v1748_v28 }
  0x18   :  { %v1756_v33 = vld [vmem:[%s3092_s1 + $0xb8] sm:$0xf0]  ;;  %289 = vmatpush.bf16.msra.mxu1 %v1767_v18  ;;  %v1755_v35 = vor.u32 %v2455_v31, %v1754_v29  ;;  %v1730_v36 = vld [vmem:[%s3092_s1 + $0x80] sm:$0xf]  ;;  %v2450_v37 = vld [vmem:[%s3092_s1 + $0x8c] sm:$0xf0] }
  0x19   :  { %302 = vmatpush.bf16.msra.mxu2 %v1771_v22  ;;  %v2448_v38 = vld [vmem:[%s3092_s1 + $0x84] sm:$0xf]  ;;  %315 = vmatpush.bf16.msra.mxu3 %v1775_v26  ;;  %v1759_v39 = vor.u32 %v2453_v32, %v1756_v33  ;;  %v1732_v40 = vld [vmem:[%s3092_s1 + $0x90] sm:$0xf0]  ;;  %v1738_v41 = vld [vmem:[%s3092_s1 + $0x88] sm:$0xf]  ;;  %v1731_v45 = vor.u32 %v2450_v37, %v1730_v36 }
  0x1a   :  { %v2451_v42 = vld [vmem:[%s3092_s1 + $0x94] sm:$0xf0]  ;;  %v2449_v43 = vld [vmem:[%s3092_s1 + $0x8c] sm:$0xf]  ;;  %v1740_v44 = vld [vmem:[%s3092_s1 + $0x98] sm:$0xf0]  ;;  %v1735_v46 = vor.u32 %v2448_v38, %v1732_v40 }
  0x1b   :  { %277 = vmatpush.bf16.msra.mxu0 %v1747_v30  ;;  %v1739_v47 = vor.u32 %v2451_v42, %v1738_v41  ;;  %v1714_v48 = vld [vmem:[%s3092_s1 + $0x60] sm:$0xf]  ;;  %v2446_v49 = vld [vmem:[%s3092_s1 + $0x6c] sm:$0xf0]  ;;  %v2444_v50 = vld [vmem:[%s3092_s1 + $0x64] sm:$0xf]  ;;  %v1743_v51 = vor.u32 %v2449_v43, %v1740_v44 }
  0x1c   :  { %290 = vmatpush.bf16.msra.mxu1 %v1751_v34  ;;  %v1716_v52 = vld [vmem:[%s3092_s1 + $0x70] sm:$0xf0]  ;;  %v1722_v53 = vld [vmem:[%s3092_s1 + $0x68] sm:$0xf]  ;;  %v2447_v54 = vld [vmem:[%s3092_s1 + $0x74] sm:$0xf0]  ;;  %v1715_v57 = vor.u32 %v2446_v49, %v1714_v48 }
  0x1d   :  { %303 = vmatpush.bf16.msra.mxu2 %v1755_v35  ;;  %316 = vmatpush.bf16.msra.mxu3 %v1759_v39  ;;  %v2445_v55 = vld [vmem:[%s3092_s1 + $0x6c] sm:$0xf]  ;;  %v1724_v56 = vld [vmem:[%s3092_s1 + $0x78] sm:$0xf0]  ;;  %v1719_v58 = vor.u32 %v2444_v50, %v1716_v52  ;;  %v1723_v59 = vor.u32 %v2447_v54, %v1722_v53  ;;  %v1698_v60 = vld [vmem:[%s3092_s1 + $0x40] sm:$0xf] }
  0x1e   :  { %v2442_v61 = vld [vmem:[%s3092_s1 + $0x4c] sm:$0xf0]  ;;  %v2440_v62 = vld [vmem:[%s3092_s1 + $0x44] sm:$0xf]  ;;  %v1727_v63 = vor.u32 %v2445_v55, %v1724_v56  ;;  %v1700_v0 = vld [vmem:[%s3092_s1 + $0x50] sm:$0xf0] }
  0x1f   :  { %278 = vmatpush.bf16.msra.mxu0 %v1731_v45  ;;  %v1706_v1 = vld [vmem:[%s3092_s1 + $0x48] sm:$0xf]  ;;  %v2443_v2 = vld [vmem:[%s3092_s1 + $0x54] sm:$0xf0]  ;;  %v2441_v3 = vld [vmem:[%s3092_s1 + $0x4c] sm:$0xf]  ;;  %v1699_v5 = vor.u32 %v2442_v61, %v1698_v60  ;;  %v1703_v6 = vor.u32 %v2440_v62, %v1700_v0 }
  0x20   :  { %291 = vmatpush.bf16.msra.mxu1 %v1735_v46  ;;  %v1708_v4 = vld [vmem:[%s3092_s1 + $0x58] sm:$0xf0]  ;;  %v1707_v7 = vor.u32 %v2443_v2, %v1706_v1  ;;  %v1682_v8 = vld [vmem:[%s3092_s1 + $0x20] sm:$0xf]  ;;  %v2438_v9 = vld [vmem:[%s3092_s1 + $0x2c] sm:$0xf0] }
  0x21   :  { %304 = vmatpush.bf16.msra.mxu2 %v1739_v47  ;;  %317 = vmatpush.bf16.msra.mxu3 %v1743_v51  ;;  %v2436_v10 = vld [vmem:[%s3092_s1 + $0x24] sm:$0xf]  ;;  %v1711_v11 = vor.u32 %v2441_v3, %v1708_v4  ;;  %v1684_v12 = vld [vmem:[%s3092_s1 + $0x30] sm:$0xf0]  ;;  %v1690_v13 = vld [vmem:[%s3092_s1 + $0x28] sm:$0xf]  ;;  %v1683_v17 = vor.u32 %v2438_v9, %v1682_v8 }
  0x22   :  { %v2439_v14 = vld [vmem:[%s3092_s1 + $0x34] sm:$0xf0]  ;;  %v2437_v15 = vld [vmem:[%s3092_s1 + $0x2c] sm:$0xf]  ;;  %v1692_v16 = vld [vmem:[%s3092_s1 + $0x38] sm:$0xf0]  ;;  %v1687_v19 = vor.u32 %v2436_v10, %v1684_v12 }
  0x23   :  { %279 = vmatpush.bf16.msra.mxu0 %v1715_v57  ;;  %v1666_v18 = vld [vmem:[%s3092_s1] sm:$0xf]  ;;  %v1691_v20 = vor.u32 %v2439_v14, %v1690_v13  ;;  %v2434_v21 = vld [vmem:[%s3092_s1 + $0xc] sm:$0xf0]  ;;  %v2432_v22 = vld [vmem:[%s3092_s1 + $0x4] sm:$0xf]  ;;  %v1695_v24 = vor.u32 %v2437_v15, %v1692_v16 }
  0x24   :  { %292 = vmatpush.bf16.msra.mxu1 %v1719_v58  ;;  %v1668_v23 = vld [vmem:[%s3092_s1 + $0x10] sm:$0xf0]  ;;  %v1674_v25 = vld [vmem:[%s3092_s1 + $0x8] sm:$0xf]  ;;  %v2435_v26 = vld [vmem:[%s3092_s1 + $0x14] sm:$0xf0]  ;;  %v1667_v31 = vor.u32 %v2434_v21, %v1666_v18 }
  0x25   :  { %305 = vmatpush.bf16.msra.mxu2 %v1723_v59  ;;  %318 = vmatpush.bf16.msra.mxu3 %v1727_v63  ;;  %v2433_v27 = vld [vmem:[%s3092_s1 + $0xc] sm:$0xf]  ;;  %v1676_v28 = vld [vmem:[%s3092_s1 + $0x18] sm:$0xf0]  ;;  %v71_v32 = vld [vmem:[#allocation3] sm:$0xff]  ;;  %v1671_v35 = vor.u32 %v2432_v22, %v1668_v23  ;;  %v1675_v36 = vor.u32 %v2435_v26, %v1674_v25  ;;  %vm1656_vm0 = vcmask 7168  }
  0x26   :  { %v1906_v29 = vld [vmem:[#allocation5 + $0xe0] sm:$0xf]  ;;  %v2494_v30 = vld [vmem:[#allocation5 + $0xec] sm:$0xf0]  ;;  %v1679_v37 = vor.u32 %v2433_v27, %v1676_v28  ;;  %v72_v42 = vpack.c.bf16 %v71_v32, %v71_v32 }
  0x27   :  { %280 = vmatpush.bf16.msra.mxu0 %v1699_v5  ;;  %v2034_v33 = vld [vmem:[#allocation5 + $0x1e0] sm:$0xf]  ;;  %v2526_v34 = vld [vmem:[#allocation5 + $0x1ec] sm:$0xf0]  ;;  %v1907_v38 = vor.u32 %v2494_v30, %v1906_v29 }
  0x28   :  { %293 = vmatpush.bf16.msra.mxu1 %v1703_v6  ;;  %v1890_v39 = vld [vmem:[#allocation5 + $0xc0] sm:$0xf]  ;;  %v2558_v41 = vld [vmem:[#allocation5 + $0x2ec] sm:$0xf0]  ;;  %v2035_v43 = vor.u32 %v2526_v34, %v2034_v33 }
  0x29   :  { %306 = vmatpush.bf16.msra.mxu2 %v1707_v7  ;;  %319 = vmatpush.bf16.msra.mxu3 %v1711_v11  ;;  %v2162_v40 = vld [vmem:[#allocation5 + $0x2e0] sm:$0xf]  ;;  %v2490_v44 = vld [vmem:[#allocation5 + $0xcc] sm:$0xf0] }
  0x2a   :  { %v2290_v45 = vld [vmem:[#allocation5 + $0x3e0] sm:$0xf]  ;;  %v2590_v46 = vld [vmem:[#allocation5 + $0x3ec] sm:$0xf0]  ;;  %v2163_v49 = vor.u32 %v2558_v41, %v2162_v40  ;;  %v1891_v50 = vor.u32 %v2490_v44, %v1890_v39 }
  0x2b   :  { %281 = vmatpush.bf16.msra.mxu0 %v1683_v17  ;;  %v2018_v47 = vld [vmem:[#allocation5 + $0x1c0] sm:$0xf]  ;;  %v2522_v48 = vld [vmem:[#allocation5 + $0x1cc] sm:$0xf0]  ;;  %v2291_v51 = vor.u32 %v2590_v46, %v2290_v45 }
  0x2c   :  { %294 = vmatpush.bf16.msra.mxu1 %v1687_v19  ;;  %v1874_v52 = vld [vmem:[#allocation5 + $0xa0] sm:$0xf]  ;;  %v2554_v54 = vld [vmem:[#allocation5 + $0x2cc] sm:$0xf0]  ;;  %v2019_v55 = vor.u32 %v2522_v48, %v2018_v47 }
  0x2d   :  { %307 = vmatpush.bf16.msra.mxu2 %v1691_v20  ;;  %320 = vmatpush.bf16.msra.mxu3 %v1695_v24  ;;  %v2146_v53 = vld [vmem:[#allocation5 + $0x2c0] sm:$0xf]  ;;  %v2486_v56 = vld [vmem:[#allocation5 + $0xac] sm:$0xf0] }
  0x2e   :  { %v2274_v57 = vld [vmem:[#allocation5 + $0x3c0] sm:$0xf]  ;;  %v2586_v58 = vld [vmem:[#allocation5 + $0x3cc] sm:$0xf0]  ;;  %v2147_v61 = vor.u32 %v2554_v54, %v2146_v53  ;;  %v1875_v62 = vor.u32 %v2486_v56, %v1874_v52 }
  0x2f   :  { %282 = vmatpush.bf16.msra.mxu0 %v1667_v31  ;;  %v2002_v59 = vld [vmem:[#allocation5 + $0x1a0] sm:$0xf]  ;;  %v2518_v60 = vld [vmem:[#allocation5 + $0x1ac] sm:$0xf0]  ;;  %v2275_v63 = vor.u32 %v2586_v58, %v2274_v57  ;;  %v2492_v57 = vld [vmem:[#allocation5 + $0xe4] sm:$0xf] }
  0x30   :  { %295 = vmatpush.bf16.msra.mxu1 %v1671_v35  ;;  %v1858_v0 = vld [vmem:[#allocation5 + $0x80] sm:$0xf]  ;;  %v2550_v2 = vld [vmem:[#allocation5 + $0x2ac] sm:$0xf0]  ;;  %v2003_v3 = vor.u32 %v2518_v60, %v2002_v59  ;;  %v1908_v58 = vld [vmem:[#allocation5 + $0xf0] sm:$0xf0] }
  0x31   :  { %308 = vmatpush.bf16.msra.mxu2 %v1675_v36  ;;  %321 = vmatpush.bf16.msra.mxu3 %v1679_v37  ;;  %v2130_v1 = vld [vmem:[#allocation5 + $0x2a0] sm:$0xf]  ;;  %v2482_v4 = vld [vmem:[#allocation5 + $0x8c] sm:$0xf0]  ;;  %v2524_v59 = vld [vmem:[#allocation5 + $0x1e4] sm:$0xf] }
  0x32   :  { %283 = vmatmul.bf16.vlgmr.msra.gmra.mxu0 %v72_v42  ;;  %v2258_v5 = vld [vmem:[#allocation5 + $0x3a0] sm:$0xf]  ;;  %v2582_v6 = vld [vmem:[#allocation5 + $0x3ac] sm:$0xf0]  ;;  %v2131_v9 = vor.u32 %v2550_v2, %v2130_v1  ;;  %v1859_v10 = vor.u32 %v2482_v4, %v1858_v0  ;;  %v2036_v60 = vld [vmem:[#allocation5 + $0x1f0] sm:$0xf0] }
  0x33   :  { %1117 = vmatpush.bf16.msrb.mxu0 %v1907_v38  ;;  %296 = vmatmul.bf16.vlgmr.msra.gmra.mxu1 %v72_v42  ;;  %v1986_v7 = vld [vmem:[#allocation5 + $0x180] sm:$0xf]  ;;  %v2514_v8 = vld [vmem:[#allocation5 + $0x18c] sm:$0xf0]  ;;  %v2259_v11 = vor.u32 %v2582_v6, %v2258_v5  ;;  %v2488_v0 = vld [vmem:[#allocation5 + $0xc4] sm:$0xf]  ;;  %v1911_v5 = vor.u32 %v2492_v57, %v1908_v58 }
  0x34   :  { %1130 = vmatpush.bf16.msrb.mxu1 %v2035_v43  ;;  %309 = vmatmul.bf16.vlgmr.msra.gmra.mxu2 %v72_v42  ;;  %v1842_v12 = vld [vmem:[#allocation5 + $0x60] sm:$0xf]  ;;  %v2546_v14 = vld [vmem:[#allocation5 + $0x28c] sm:$0xf0]  ;;  %v1987_v15 = vor.u32 %v2514_v8, %v1986_v7  ;;  %v2556_v7 = vld [vmem:[#allocation5 + $0x2e4] sm:$0xf] }
  0x35   :  { %322 = vmatmul.bf16.vlgmr.msra.gmra.mxu3 %v72_v42  ;;  %1143 = vmatpush.bf16.msrb.mxu2 %v2163_v49  ;;  %v2114_v13 = vld [vmem:[#allocation5 + $0x280] sm:$0xf]  ;;  %v2478_v16 = vld [vmem:[#allocation5 + $0x6c] sm:$0xf0]  ;;  %v2164_v8 = vld [vmem:[#allocation5 + $0x2f0] sm:$0xf0] }
  0x36   :  { %1156 = vmatpush.bf16.msrb.mxu3 %v2291_v51  ;;  %v2242_v17 = vld [vmem:[#allocation5 + $0x380] sm:$0xf]  ;;  %v2578_v18 = vld [vmem:[#allocation5 + $0x38c] sm:$0xf0]  ;;  %v2115_v21 = vor.u32 %v2546_v14, %v2114_v13  ;;  %v1843_v22 = vor.u32 %v2478_v16, %v1842_v12  ;;  %v2292_v12 = vld [vmem:[#allocation5 + $0x3f0] sm:$0xf0] }
  0x37   :  { %1118 = vmatpush.bf16.msrb.mxu0 %v1891_v50  ;;  %v1970_v19 = vld [vmem:[#allocation5 + $0x160] sm:$0xf]  ;;  %v2510_v20 = vld [vmem:[#allocation5 + $0x16c] sm:$0xf0]  ;;  %v2243_v23 = vor.u32 %v2578_v18, %v2242_v17  ;;  %v2520_v13 = vld [vmem:[#allocation5 + $0x1c4] sm:$0xf]  ;;  %v2167_v17 = vor.u32 %v2556_v7, %v2164_v8 }
  0x38   :  { %1131 = vmatpush.bf16.msrb.mxu1 %v2019_v55  ;;  %v1826_v24 = vld [vmem:[#allocation5 + $0x40] sm:$0xf]  ;;  %v2542_v26 = vld [vmem:[#allocation5 + $0x26c] sm:$0xf0]  ;;  %v1971_v27 = vor.u32 %v2510_v20, %v1970_v19  ;;  %v2020_v14 = vld [vmem:[#allocation5 + $0x1d0] sm:$0xf0] }
  0x39   :  { %1144 = vmatpush.bf16.msrb.mxu2 %v2147_v61  ;;  %v2098_v25 = vld [vmem:[#allocation5 + $0x260] sm:$0xf]  ;;  %v2474_v28 = vld [vmem:[#allocation5 + $0x4c] sm:$0xf0]  ;;  %v2484_v20 = vld [vmem:[#allocation5 + $0xa4] sm:$0xf] }
  0x3a   :  { %1157 = vmatpush.bf16.msrb.mxu3 %v2275_v63  ;;  %v2226_v29 = vld [vmem:[#allocation5 + $0x360] sm:$0xf]  ;;  %v2574_v30 = vld [vmem:[#allocation5 + $0x36c] sm:$0xf0]  ;;  %v2099_v33 = vor.u32 %v2542_v26, %v2098_v25  ;;  %v1827_v34 = vor.u32 %v2474_v28, %v1826_v24  ;;  %v1876_v24 = vld [vmem:[#allocation5 + $0xb0] sm:$0xf0] }
  0x3b   :  { %1119 = vmatpush.bf16.msrb.mxu0 %v1875_v62  ;;  %v1954_v31 = vld [vmem:[#allocation5 + $0x140] sm:$0xf]  ;;  %v2506_v32 = vld [vmem:[#allocation5 + $0x14c] sm:$0xf0]  ;;  %v2227_v35 = vor.u32 %v2574_v30, %v2226_v29  ;;  %v2584_v25 = vld [vmem:[#allocation5 + $0x3c4] sm:$0xf]  ;;  %v1879_v30 = vor.u32 %v2484_v20, %v1876_v24 }
  0x3c   :  { %1132 = vmatpush.bf16.msrb.mxu1 %v2003_v3  ;;  %v1810_v36 = vld [vmem:[#allocation5 + $0x20] sm:$0xf]  ;;  %v2538_v38 = vld [vmem:[#allocation5 + $0x24c] sm:$0xf0]  ;;  %v1955_v39 = vor.u32 %v2506_v32, %v1954_v31  ;;  %v2276_v26 = vld [vmem:[#allocation5 + $0x3d0] sm:$0xf0] }
  0x3d   :  { %1145 = vmatpush.bf16.msrb.mxu2 %v2131_v9  ;;  %v2082_v37 = vld [vmem:[#allocation5 + $0x240] sm:$0xf]  ;;  %v2470_v40 = vld [vmem:[#allocation5 + $0x2c] sm:$0xf0]  ;;  %v2039_v9 = vor.u32 %v2524_v59, %v2036_v60  ;;  %v2004_v28 = vld [vmem:[#allocation5 + $0x1b0] sm:$0xf0]  ;;  %v2279_v31 = vor.u32 %v2584_v25, %v2276_v26 }
  0x3e   :  { %1158 = vmatpush.bf16.msrb.mxu3 %v2259_v11  ;;  %v2210_v41 = vld [vmem:[#allocation5 + $0x340] sm:$0xf]  ;;  %v2570_v42 = vld [vmem:[#allocation5 + $0x34c] sm:$0xf0]  ;;  %v2083_v45 = vor.u32 %v2538_v38, %v2082_v37  ;;  %v1811_v48 = vor.u32 %v2470_v40, %v1810_v36  ;;  %v2588_v11 = vld [vmem:[#allocation5 + $0x3e4] sm:$0xf] }
  0x3f   :  { %1120 = vmatpush.bf16.msrb.mxu0 %v1859_v10  ;;  %v1938_v43 = vld [vmem:[#allocation5 + $0x120] sm:$0xf]  ;;  %v2502_v44 = vld [vmem:[#allocation5 + $0x12c] sm:$0xf0]  ;;  %v2211_v49 = vor.u32 %v2570_v42, %v2210_v41  ;;  %v1892_v10 = vld [vmem:[#allocation5 + $0xd0] sm:$0xf0]  ;;  %v2295_v19 = vor.u32 %v2588_v11, %v2292_v12 }
  0x40   :  { %1133 = vmatpush.bf16.msrb.mxu1 %v1987_v15  ;;  %v1794_v46 = vld [vmem:[#allocation5] sm:$0xf]  ;;  %v2466_v47 = vld [vmem:[#allocation5 + $0xc] sm:$0xf0]  ;;  %v1939_v53 = vor.u32 %v2502_v44, %v1938_v43  ;;  %v1895_v18 = vor.u32 %v2488_v0, %v1892_v10  ;;  %v2480_v32 = vld [vmem:[#allocation5 + $0x84] sm:$0xf] }
  0x41   :  { %1146 = vmatpush.bf16.msrb.mxu2 %v2115_v21  ;;  %v1922_v50 = vld [vmem:[#allocation5 + $0x100] sm:$0xf]  ;;  %v2534_v52 = vld [vmem:[#allocation5 + $0x22c] sm:$0xf0]  ;;  %v1795_v62 = vor.u32 %v2466_v47, %v1794_v46  ;;  %v2552_v21 = vld [vmem:[#allocation5 + $0x2c4] sm:$0xf] }
  0x42   :  { %1159 = vmatpush.bf16.msrb.mxu3 %v2243_v23  ;;  %v2066_v51 = vld [vmem:[#allocation5 + $0x220] sm:$0xf]  ;;  %v2498_v54 = vld [vmem:[#allocation5 + $0x10c] sm:$0xf0]  ;;  %v2023_v23 = vor.u32 %v2520_v13, %v2020_v14  ;;  %v1860_v36 = vld [vmem:[#allocation5 + $0x90] sm:$0xf0] }
  0x43   :  { %1121 = vmatpush.bf16.msrb.mxu0 %v1843_v22  ;;  %v2194_v55 = vld [vmem:[#allocation5 + $0x320] sm:$0xf]  ;;  %v2566_v56 = vld [vmem:[#allocation5 + $0x32c] sm:$0xf0]  ;;  %v2067_v61 = vor.u32 %v2534_v52, %v2066_v51  ;;  %v1923_v4 = vor.u32 %v2498_v54, %v1922_v50  ;;  %v2148_v22 = vld [vmem:[#allocation5 + $0x2d0] sm:$0xf0]  ;;  %v1863_v42 = vor.u32 %v2480_v32, %v1860_v36 }
  0x44   :  { %1134 = vmatpush.bf16.msrb.mxu1 %v1971_v27  ;;  %v2195_v63 = vor.u32 %v2566_v56, %v2194_v55  ;;  %v2050_v1 = vld [vmem:[#allocation5 + $0x200] sm:$0xf]  ;;  %v2530_v2 = vld [vmem:[#allocation5 + $0x20c] sm:$0xf0]  ;;  %v2516_v27 = vld [vmem:[#allocation5 + $0x1a4] sm:$0xf]  ;;  %v2151_v29 = vor.u32 %v2552_v21, %v2148_v22 }
  0x45   :  { %1147 = vmatpush.bf16.msrb.mxu2 %v2099_v33  ;;  %v2178_v3 = vld [vmem:[#allocation5 + $0x300] sm:$0xf]  ;;  %v2562_v6 = vld [vmem:[#allocation5 + $0x30c] sm:$0xf0]  ;;  %v2051_v15 = vor.u32 %v2530_v2, %v2050_v1  ;;  %v2548_v33 = vld [vmem:[#allocation5 + $0x2a4] sm:$0xf] }
  0x46   :  { %1160 = vmatpush.bf16.msrb.mxu3 %v2227_v35  ;;  %v2179_v16 = vor.u32 %v2562_v6, %v2178_v3  ;;  %v2007_v35 = vor.u32 %v2516_v27, %v2004_v28  ;;  %v2580_v37 = vld [vmem:[#allocation5 + $0x3a4] sm:$0xf]  ;;  %v2260_v38 = vld [vmem:[#allocation5 + $0x3b0] sm:$0xf0] }
  0x47   :  { %1122 = vmatpush.bf16.msrb.mxu0 %v1827_v34  ;;  %v2132_v34 = vld [vmem:[#allocation5 + $0x2b0] sm:$0xf0]  ;;  %v2263_v43 = vor.u32 %v2580_v37, %v2260_v38  ;;  %v2476_v44 = vld [vmem:[#allocation5 + $0x64] sm:$0xf] }
  0x48   :  { %1135 = vmatpush.bf16.msrb.mxu1 %v1955_v39  ;;  %v2512_v39 = vld [vmem:[#allocation5 + $0x184] sm:$0xf]  ;;  %v1988_v40 = vld [vmem:[#allocation5 + $0x190] sm:$0xf0]  ;;  %v2135_v41 = vor.u32 %v2548_v33, %v2132_v34 }
  0x49   :  { %1148 = vmatpush.bf16.msrb.mxu2 %v2083_v45  ;;  %v2544_v45 = vld [vmem:[#allocation5 + $0x284] sm:$0xf]  ;;  %v2116_v46 = vld [vmem:[#allocation5 + $0x290] sm:$0xf0]  ;;  %v1991_v47 = vor.u32 %v2512_v39, %v1988_v40 }
  0x4a   :  { %1161 = vmatpush.bf16.msrb.mxu3 %v2211_v49  ;;  %v2576_v49 = vld [vmem:[#allocation5 + $0x384] sm:$0xf]  ;;  %v2244_v50 = vld [vmem:[#allocation5 + $0x390] sm:$0xf0] }
  0x4b   :  { %1123 = vmatpush.bf16.msrb.mxu0 %v1811_v48  ;;  %v1844_v48 = vld [vmem:[#allocation5 + $0x70] sm:$0xf0]  ;;  %v2508_v51 = vld [vmem:[#allocation5 + $0x164] sm:$0xf]  ;;  %v2247_v55 = vor.u32 %v2576_v49, %v2244_v50 }
  0x4c   :  { %1136 = vmatpush.bf16.msrb.mxu1 %v1939_v53  ;;  %v1972_v52 = vld [vmem:[#allocation5 + $0x170] sm:$0xf0]  ;;  %v2119_v53 = vor.u32 %v2544_v45, %v2116_v46  ;;  %v1847_v54 = vor.u32 %v2476_v44, %v1844_v48  ;;  %v2472_v57 = vld [vmem:[#allocation5 + $0x44] sm:$0xf]  ;;  %v1914_v44 = vld [vmem:[#allocation5 + $0xe8] sm:$0xf] }
  0x4d   :  { %1149 = vmatpush.bf16.msrb.mxu2 %v2067_v61  ;;  %v1975_v56 = vor.u32 %v2508_v51, %v1972_v52  ;;  %v1828_v58 = vld [vmem:[#allocation5 + $0x50] sm:$0xf0]  ;;  %v2504_v59 = vld [vmem:[#allocation5 + $0x144] sm:$0xf]  ;;  %v2495_v45 = vld [vmem:[#allocation5 + $0xf4] sm:$0xf0] }
  0x4e   :  { %1162 = vmatpush.bf16.msrb.mxu3 %v2195_v63  ;;  %v1831_v60 = vor.u32 %v2472_v57, %v1828_v58  ;;  %v1956_v61 = vld [vmem:[#allocation5 + $0x150] sm:$0xf0]  ;;  %v2540_v63 = vld [vmem:[#allocation5 + $0x264] sm:$0xf]  ;;  %v2527_v48 = vld [vmem:[#allocation5 + $0x1f4] sm:$0xf0]  ;;  %v1915_v52 = vor.u32 %v2495_v45, %v1914_v44 }
  0x4f   :  { %1124 = vmatpush.bf16.msrb.mxu0 %v1795_v62  ;;  %v1959_v62 = vor.u32 %v2504_v59, %v1956_v61  ;;  %v2100_v0 = vld [vmem:[#allocation5 + $0x270] sm:$0xf0]  ;;  %v2572_v2 = vld [vmem:[#allocation5 + $0x364] sm:$0xf]  ;;  %v2491_v57 = vld [vmem:[#allocation5 + $0xd4] sm:$0xf0] }
  0x50   :  { %1137 = vmatpush.bf16.msrb.mxu1 %v1923_v4  ;;  %v2103_v1 = vor.u32 %v2540_v63, %v2100_v0  ;;  %v2228_v3 = vld [vmem:[#allocation5 + $0x370] sm:$0xf0]  ;;  %v2500_v7 = vld [vmem:[#allocation5 + $0x124] sm:$0xf]  ;;  %v2523_v63 = vld [vmem:[#allocation5 + $0x1d4] sm:$0xf0] }
  0x51   :  { %1150 = vmatpush.bf16.msrb.mxu2 %v2051_v15  ;;  %v2231_v4 = vor.u32 %v2572_v2, %v2228_v3  ;;  %v1812_v6 = vld [vmem:[#allocation5 + $0x30] sm:$0xf0]  ;;  %v2536_v11 = vld [vmem:[#allocation5 + $0x244] sm:$0xf]  ;;  %v2170_v2 = vld [vmem:[#allocation5 + $0x2e8] sm:$0xf] }
  0x52   :  { %1163 = vmatpush.bf16.msrb.mxu3 %v2179_v16  ;;  %v2084_v12 = vld [vmem:[#allocation5 + $0x250] sm:$0xf0]  ;;  %v2568_v13 = vld [vmem:[#allocation5 + $0x344] sm:$0xf]  ;;  %v2559_v3 = vld [vmem:[#allocation5 + $0x2f4] sm:$0xf0] }
  0x53   :  { %1169 = vmatpush.bf16.msra.mxu0 %v1911_v5  ;;  %v2468_v5 = vld [vmem:[#allocation5 + $0x24] sm:$0xf]  ;;  %v2087_v14 = vor.u32 %v2536_v11, %v2084_v12  ;;  %v2212_v15 = vld [vmem:[#allocation5 + $0x350] sm:$0xf0]  ;;  %v2487_v11 = vld [vmem:[#allocation5 + $0xb4] sm:$0xf0] }
  0x54   :  { %1182 = vmatpush.bf16.msra.mxu1 %v2039_v9  ;;  %v1815_v8 = vor.u32 %v2468_v5, %v1812_v6  ;;  %v1940_v9 = vld [vmem:[#allocation5 + $0x130] sm:$0xf0]  ;;  %v2215_v16 = vor.u32 %v2568_v13, %v2212_v15  ;;  %v2496_v20 = vld [vmem:[#allocation5 + $0x104] sm:$0xf]  ;;  %v2298_v6 = vld [vmem:[#allocation5 + $0x3e8] sm:$0xf] }
  0x55   :  { %1195 = vmatpush.bf16.msra.mxu2 %v2167_v17  ;;  %v1943_v10 = vor.u32 %v2500_v7, %v1940_v9  ;;  %v2464_v17 = vld [vmem:[#allocation5 + $0x4] sm:$0xf]  ;;  %v1924_v21 = vld [vmem:[#allocation5 + $0x110] sm:$0xf0]  ;;  %v2591_v7 = vld [vmem:[#allocation5 + $0x3f4] sm:$0xf0] }
  0x56   :  { %1208 = vmatpush.bf16.msra.mxu3 %v2295_v19  ;;  %v1927_v22 = vor.u32 %v2496_v20, %v1924_v21  ;;  %v2068_v24 = vld [vmem:[#allocation5 + $0x230] sm:$0xf0]  ;;  %v2564_v25 = vld [vmem:[#allocation5 + $0x324] sm:$0xf]  ;;  %v2010_v13 = vld [vmem:[#allocation5 + $0x1a8] sm:$0xf] }
  0x57   :  { %1170 = vmatpush.bf16.msra.mxu0 %v1895_v18  ;;  %v1796_v18 = vld [vmem:[#allocation5 + $0x10] sm:$0xf0]  ;;  %v2560_v32 = vld [vmem:[#allocation5 + $0x304] sm:$0xf]  ;;  %v2154_v20 = vld [vmem:[#allocation5 + $0x2c8] sm:$0xf] }
  0x58   :  { %1183 = vmatpush.bf16.msra.mxu1 %v2023_v23  ;;  %v1799_v19 = vor.u32 %v2464_v17, %v1796_v18  ;;  %v2532_v23 = vld [vmem:[#allocation5 + $0x224] sm:$0xf]  ;;  %v2196_v27 = vld [vmem:[#allocation5 + $0x330] sm:$0xf0]  ;;  %v2299_v18 = vor.u32 %v2591_v7, %v2298_v6  ;;  %v2555_v21 = vld [vmem:[#allocation5 + $0x2d4] sm:$0xf0] }
  0x59   :  { %1196 = vmatpush.bf16.msra.mxu2 %v2151_v29  ;;  %v2071_v26 = vor.u32 %v2532_v23, %v2068_v24  ;;  %v2199_v28 = vor.u32 %v2564_v25, %v2196_v27  ;;  %v2528_v29 = vld [vmem:[#allocation5 + $0x204] sm:$0xf]  ;;  %v2180_v33 = vld [vmem:[#allocation5 + $0x310] sm:$0xf0]  ;;  %v1866_v27 = vld [vmem:[#allocation5 + $0x88] sm:$0xf] }
  0x5a   :  { %1209 = vmatpush.bf16.msra.mxu3 %v2279_v31  ;;  %v2183_v34 = vor.u32 %v2560_v32, %v2180_v33  ;;  %v2155_v32 = vor.u32 %v2555_v21, %v2154_v20  ;;  %v1916_v21 = vld [vmem:[#allocation5 + $0xf8] sm:$0xf0] }
  0x5b   :  { %1171 = vmatpush.bf16.msra.mxu0 %v1879_v30  ;;  %v2052_v30 = vld [vmem:[#allocation5 + $0x210] sm:$0xf0] }
  0x5c   :  { %1184 = vmatpush.bf16.msra.mxu1 %v2007_v35  ;;  %v2055_v31 = vor.u32 %v2528_v29, %v2052_v30  ;;  %v105_v35 = vld [vmem:[%s3093_s2] sm:$0xf]  ;;  %v1994_v30 = vld [vmem:[#allocation5 + $0x188] sm:$0xf] }
  0x5d   :  { %1197 = vmatpush.bf16.msra.mxu2 %v2135_v41  ;;  %v107_v36 = vperm.slane %v105_v35, 0  ;;  %v108_v37 = vperm.slane %v105_v35, 1  ;;  %v110_v50 = vperm.slane %v105_v35, 3 }
  0x5e   :  { %1210 = vmatpush.bf16.msra.mxu3 %v2263_v43 }
  0x5f   :  { %1172 = vmatpush.bf16.msra.mxu0 %v1863_v42  ;;  %v109_v42 = vperm.slane %v105_v35, 2  ;;  %v2138_v35 = vld [vmem:[#allocation5 + $0x2a8] sm:$0xf] }
  0x60   :  { %1185 = vmatpush.bf16.msra.mxu1 %v1991_v47  ;;  %v2042_v47 = vld [vmem:[#allocation5 + $0x1e8] sm:$0xf] }
  0x61   :  { %1198 = vmatpush.bf16.msra.mxu2 %v2119_v53 }
  0x62   :  { %1211 = vmatpush.bf16.msra.mxu3 %v2247_v55  ;;  %v2043_v55 = vor.u32 %v2527_v48, %v2042_v47  ;;  %v2547_v47 = vld [vmem:[#allocation5 + $0x294] sm:$0xf0] }
  0x63   :  { %1173 = vmatpush.bf16.msra.mxu0 %v1847_v54 }
  0x64   :  { %1186 = vmatpush.bf16.msra.mxu1 %v1975_v56  ;;  %v1898_v56 = vld [vmem:[#allocation5 + $0xc8] sm:$0xf] }
  0x65   :  { %1199 = vmatpush.bf16.msra.mxu2 %v2103_v1  ;;  %v1899_v5 = vor.u32 %v2491_v57, %v1898_v56  ;;  %v2507_v56 = vld [vmem:[#allocation5 + $0x154] sm:$0xf0] }
  0x66   :  { %1212 = vmatpush.bf16.msra.mxu3 %v2231_v4 }
  0x67   :  { %1174 = vmatpush.bf16.msra.mxu0 %v1831_v60 }
  0x68   :  { %1187 = vmatpush.bf16.msra.mxu1 %v1959_v62  ;;  %v2026_v62 = vld [vmem:[#allocation5 + $0x1c8] sm:$0xf] }
  0x69   :  { %1200 = vmatpush.bf16.msra.mxu2 %v2087_v14  ;;  %v2027_v9 = vor.u32 %v2523_v63, %v2026_v62  ;;  %v2519_v14 = vld [vmem:[#allocation5 + $0x1b4] sm:$0xf0] }
  0x6a   :  { %1213 = vmatpush.bf16.msra.mxu3 %v2215_v16  ;;  %v2171_v16 = vor.u32 %v2559_v3, %v2170_v2  ;;  %v2011_v25 = vor.u32 %v2519_v14, %v2010_v13  ;;  %v1818_v2 = vld [vmem:[#allocation5 + $0x28] sm:$0xf]  ;;  %v2471_v3 = vld [vmem:[#allocation5 + $0x34] sm:$0xf0] }
  0x6b   :  { %1175 = vmatpush.bf16.msra.mxu0 %v1815_v8  ;;  %v2571_v13 = vld [vmem:[#allocation5 + $0x354] sm:$0xf0]  ;;  %v1802_v14 = vld [vmem:[#allocation5 + $0x8] sm:$0xf] }
  0x6c   :  { %1188 = vmatpush.bf16.msra.mxu1 %v1943_v10  ;;  %v1882_v10 = vld [vmem:[#allocation5 + $0xa8] sm:$0xf] }
  0x6d   :  { %1201 = vmatpush.bf16.msra.mxu2 %v2071_v26  ;;  %v2587_v26 = vld [vmem:[#allocation5 + $0x3d4] sm:$0xf0] }
  0x6e   :  { %1214 = vmatpush.bf16.msra.mxu3 %v2199_v28  ;;  %v2483_v28 = vld [vmem:[#allocation5 + $0x94] sm:$0xf0] }
  0x6f   :  { %1176 = vmatpush.bf16.msra.mxu0 %v1799_v19  ;;  %v1883_v19 = vor.u32 %v2487_v11, %v1882_v10  ;;  %v2218_v10 = vld [vmem:[#allocation5 + $0x348] sm:$0xf]  ;;  %v1819_v11 = vor.u32 %v2471_v3, %v1818_v2  ;;  %v2481_v2 = vld [vmem:[#allocation5 + $0x8c] sm:$0xf]  ;;  %v1868_v3 = vld [vmem:[#allocation5 + $0x98] sm:$0xf0] }
  0x70   :  { %1189 = vmatpush.bf16.msra.mxu1 %v1927_v22  ;;  %v2282_v22 = vld [vmem:[#allocation5 + $0x3c8] sm:$0xf] }
  0x71   :  { %1202 = vmatpush.bf16.msra.mxu2 %v2055_v31  ;;  %v2515_v31 = vld [vmem:[#allocation5 + $0x194] sm:$0xf0]  ;;  %v2283_v33 = vor.u32 %v2587_v26, %v2282_v22  ;;  %v2525_v22 = vld [vmem:[#allocation5 + $0x1ec] sm:$0xf]  ;;  %v2074_v26 = vld [vmem:[#allocation5 + $0x228] sm:$0xf] }
  0x72   :  { %1215 = vmatpush.bf16.msra.mxu3 %v2183_v34  ;;  %v1867_v34 = vor.u32 %v2483_v28, %v1866_v27  ;;  %v2535_v27 = vld [vmem:[#allocation5 + $0x234] sm:$0xf0] }
  0xaf   :  { %v284_v38 = vpop.f32.mrf.mxu0 }
  0xb0   :  { %v285_v39 = vadd.f32 %v284_v38, %v107_v36  ;;  %v297_v40 = vpop.f32.mrf.mxu1  ;;  %v2551_v36 = vld [vmem:[#allocation5 + $0x2b4] sm:$0xf0]  ;;  %v2266_v38 = vld [vmem:[#allocation5 + $0x3a8] sm:$0xf] }
  0xb1   :  { %v298_v41 = vadd.f32 %v297_v40, %v108_v37  ;;  %v1995_v37 = vor.u32 %v2515_v31, %v1994_v30  ;;  %v1850_v40 = vld [vmem:[#allocation5 + $0x68] sm:$0xf]  ;;  %v2139_v44 = vor.u32 %v2551_v36, %v2138_v35  ;;  %v2567_v31 = vld [vmem:[#allocation5 + $0x334] sm:$0xf0]  ;;  %v2075_v35 = vor.u32 %v2535_v27, %v2074_v26  ;;  %v1900_v36 = vld [vmem:[#allocation5 + $0xd8] sm:$0xf0] }
  0xb2   :  { %v327_v43 = vmul.f32 0.01, %v285_v39  ;;  %v2202_v30 = vld [vmem:[#allocation5 + $0x328] sm:$0xf]  ;;  %v2577_v26 = vld [vmem:[#allocation5 + $0x38c] sm:$0xf] }
  0xb3   :  { %v328_v46 = vmul.f32 0.01, %v298_v41  ;;  %v2252_v27 = vld [vmem:[#allocation5 + $0x398] sm:$0xf0] }
  0xb4   :  { %v331_v49 = vmax.f32 %v285_v39, %v327_v43  ;;  %v2583_v39 = vld [vmem:[#allocation5 + $0x3b4] sm:$0xf0] }
  0xb5   :  { %v332_v51 = vmax.f32 %v298_v41, %v328_v46  ;;  %v2479_v41 = vld [vmem:[#allocation5 + $0x74] sm:$0xf0]  ;;  %v2267_v45 = vor.u32 %v2583_v39, %v2266_v38  ;;  %v2122_v46 = vld [vmem:[#allocation5 + $0x288] sm:$0xf]  ;;  %v2028_v38 = vld [vmem:[#allocation5 + $0x1d8] sm:$0xf0]  ;;  %v2203_v39 = vor.u32 %v2567_v31, %v2202_v30 }
  0xb6   :  { %v2962_v53 = vpack.c.bf16 %v331_v49, %v331_v49  ;;  %v2511_v43 = vld [vmem:[#allocation5 + $0x174] sm:$0xf0]  ;;  %v1851_v48 = vor.u32 %v2479_v41, %v1850_v40  ;;  %v2123_v57 = vor.u32 %v2547_v47, %v2122_v46  ;;  %v2058_v40 = vld [vmem:[#allocation5 + $0x208] sm:$0xf]  ;;  %v2505_v30 = vld [vmem:[#allocation5 + $0x14c] sm:$0xf] }
  0xb7   :  { %v310_v54 = vpop.f32.mrf.mxu2  ;;  %v2964_v58 = vpack.c.bf16 %v332_v51, %v332_v51  ;;  %v286_v61 = vpop.f32.mrf.mxu0  ;;  %v2579_v51 = vld [vmem:[#allocation5 + $0x394] sm:$0xf0]  ;;  %v1964_v31 = vld [vmem:[#allocation5 + $0x158] sm:$0xf0] }
  0xb8   :  { %v311_v59 = vadd.f32 %v310_v54, %v109_v42  ;;  %v323_v60 = vpop.f32.mrf.mxu3  ;;  %1125 = vmatmul.bf16.vlgmr.msrb.gmra.mxu0 %v2962_v53  ;;  %v299_v1 = vpop.f32.mrf.mxu1  ;;  %v1978_v42 = vld [vmem:[#allocation5 + $0x168] sm:$0xf]  ;;  %v2475_v54 = vld [vmem:[#allocation5 + $0x54] sm:$0xf0] }
  0xb9   :  { %v324_v0 = vadd.f32 %v323_v60, %v110_v50  ;;  %1138 = vmatmul.bf16.vlgmr.msrb.gmra.mxu1 %v2964_v58  ;;  %1221 = vmatpush.bf16.msrb.mxu0 %v1915_v52  ;;  %v1979_v49 = vor.u32 %v2511_v43, %v1978_v42  ;;  %v2250_v50 = vld [vmem:[#allocation5 + $0x388] sm:$0xf]  ;;  %v2543_v61 = vld [vmem:[#allocation5 + $0x274] sm:$0xf0] }
  0xba   :  { %v329_v4 = vmul.f32 0.01, %v311_v59  ;;  %1234 = vmatpush.bf16.msrb.mxu1 %v2043_v55  ;;  %v1834_v52 = vld [vmem:[#allocation5 + $0x48] sm:$0xf]  ;;  %v2575_v1 = vld [vmem:[#allocation5 + $0x374] sm:$0xf0] }
  0xbb   :  { %v330_v8 = vmul.f32 0.01, %v324_v0  ;;  %v1962_v55 = vld [vmem:[#allocation5 + $0x148] sm:$0xf]  ;;  %v1835_v62 = vor.u32 %v2475_v54, %v1834_v52  ;;  %v2531_v41 = vld [vmem:[#allocation5 + $0x214] sm:$0xf0] }
  0xbc   :  { %v333_v12 = vmax.f32 %v311_v59, %v329_v4  ;;  %v2251_v59 = vor.u32 %v2579_v51, %v2250_v50  ;;  %v2106_v60 = vld [vmem:[#allocation5 + $0x268] sm:$0xf]  ;;  %v1963_v63 = vor.u32 %v2507_v56, %v1962_v55  ;;  %v2563_v43 = vld [vmem:[#allocation5 + $0x314] sm:$0xf0]  ;;  %v2485_v50 = vld [vmem:[#allocation5 + $0xac] sm:$0xf]  ;;  %v2059_v51 = vor.u32 %v2531_v41, %v2058_v40 }
  0xbd   :  { %v334_v15 = vmax.f32 %v324_v0, %v330_v8  ;;  %1222 = vmatpush.bf16.msrb.mxu0 %v1899_v5  ;;  %v2234_v0 = vld [vmem:[#allocation5 + $0x368] sm:$0xf]  ;;  %v2503_v5 = vld [vmem:[#allocation5 + $0x134] sm:$0xf0]  ;;  %v2107_v6 = vor.u32 %v2543_v61, %v2106_v60  ;;  %v1884_v52 = vld [vmem:[#allocation5 + $0xb8] sm:$0xf0] }
  0xbe   :  { %v2968_v17 = vpack.c.bf16 %v333_v12, %v333_v12  ;;  %1235 = vmatpush.bf16.msrb.mxu1 %v2027_v9  ;;  %v1946_v4 = vld [vmem:[#allocation5 + $0x128] sm:$0xf]  ;;  %v2235_v7 = vor.u32 %v2575_v1, %v2234_v0  ;;  %v2539_v9 = vld [vmem:[#allocation5 + $0x254] sm:$0xf0]  ;;  %v2517_v54 = vld [vmem:[#allocation5 + $0x1ac] sm:$0xf] }
  0xbf   :  { %v2970_v23 = vpack.c.bf16 %v334_v15, %v334_v15  ;;  %v312_v24 = vpop.f32.mrf.mxu2  ;;  %v2090_v8 = vld [vmem:[#allocation5 + $0x248] sm:$0xf]  ;;  %v1947_v12 = vor.u32 %v2503_v5, %v1946_v4  ;;  %v2467_v15 = vld [vmem:[#allocation5 + $0x14] sm:$0xf0]  ;;  %v2012_v55 = vld [vmem:[#allocation5 + $0x1b8] sm:$0xf0] }
  0xc0   :  { %v325_v29 = vpop.f32.mrf.mxu3  ;;  %1151 = vmatmul.bf16.vlgmr.msrb.gmra.mxu2 %v2968_v17  ;;  %v2091_v20 = vor.u32 %v2539_v9, %v2090_v8  ;;  %v2044_v24 = vld [vmem:[#allocation5 + $0x1f8] sm:$0xf0]  ;;  %v1803_v28 = vor.u32 %v2467_v15, %v1802_v14  ;;  %v2186_v42 = vld [vmem:[#allocation5 + $0x308] sm:$0xf]  ;;  %v2553_v60 = vld [vmem:[#allocation5 + $0x2cc] sm:$0xf] }
  0xc1   :  { %1164 = vmatmul.bf16.vlgmr.msrb.gmra.mxu3 %v2970_v23  ;;  %1247 = vmatpush.bf16.msrb.mxu2 %v2171_v16  ;;  %v1930_v16 = vld [vmem:[#allocation5 + $0x108] sm:$0xf]  ;;  %v2187_v56 = vor.u32 %v2563_v43, %v2186_v42  ;;  %v2156_v61 = vld [vmem:[#allocation5 + $0x2d8] sm:$0xf0]  ;;  %v2585_v0 = vld [vmem:[#allocation5 + $0x3cc] sm:$0xf] }
  0xc2   :  { %1260 = vmatpush.bf16.msrb.mxu3 %v2299_v18  ;;  %1223 = vmatpush.bf16.msrb.mxu0 %v1883_v19  ;;  %v2499_v18 = vld [vmem:[#allocation5 + $0x114] sm:$0xf0]  ;;  %v2493_v19 = vld [vmem:[#allocation5 + $0xec] sm:$0xf]  ;;  %v2284_v1 = vld [vmem:[#allocation5 + $0x3d8] sm:$0xf0] }
  0xc3   :  { %1236 = vmatpush.bf16.msrb.mxu1 %v2011_v25  ;;  %v2219_v25 = vor.u32 %v2571_v13, %v2218_v10  ;;  %v1931_v29 = vor.u32 %v2499_v18, %v1930_v16  ;;  %v2513_v4 = vld [vmem:[#allocation5 + $0x18c] sm:$0xf]  ;;  %v1996_v5 = vld [vmem:[#allocation5 + $0x198] sm:$0xf0]  ;;  %v1871_v10 = vor.u32 %v2481_v2, %v1868_v3 }
  0xc4   :  { %v2549_v8 = vld [vmem:[#allocation5 + $0x2ac] sm:$0xf]  ;;  %v2140_v9 = vld [vmem:[#allocation5 + $0x2b8] sm:$0xf0] }
  0xc5   :  { %1248 = vmatpush.bf16.msrb.mxu2 %v2155_v32  ;;  %v1919_v32 = vor.u32 %v2493_v19, %v1916_v21  ;;  %v2268_v13 = vld [vmem:[#allocation5 + $0x3b8] sm:$0xf0]  ;;  %v2477_v14 = vld [vmem:[#allocation5 + $0x6c] sm:$0xf]  ;;  %v2143_v19 = vor.u32 %v2549_v8, %v2140_v9 }
  0xc6   :  { %1261 = vmatpush.bf16.msrb.mxu3 %v2283_v33  ;;  %1224 = vmatpush.bf16.msrb.mxu0 %v1867_v34  ;;  %v2047_v33 = vor.u32 %v2525_v22, %v2044_v24  ;;  %v2489_v34 = vld [vmem:[#allocation5 + $0xcc] sm:$0xf]  ;;  %v1852_v15 = vld [vmem:[#allocation5 + $0x78] sm:$0xf0] }
  0xc7   :  { %1237 = vmatpush.bf16.msrb.mxu1 %v1995_v37  ;;  %v2521_v37 = vld [vmem:[#allocation5 + $0x1cc] sm:$0xf]  ;;  %v1903_v46 = vor.u32 %v2489_v34, %v1900_v36  ;;  %v1980_v18 = vld [vmem:[#allocation5 + $0x178] sm:$0xf0]  ;;  %v1855_v24 = vor.u32 %v2477_v14, %v1852_v15 }
  0xc8   :  { %1177 = vmatmul.bf16.vlgmr.msra.gmra.mxu0 %v2962_v53  ;;  %v2031_v47 = vor.u32 %v2521_v37, %v2028_v38  ;;  %v2509_v16 = vld [vmem:[#allocation5 + $0x16c] sm:$0xf]  ;;  %v2124_v22 = vld [vmem:[#allocation5 + $0x298] sm:$0xf0]  ;;  %v1967_v37 = vor.u32 %v2505_v30, %v1964_v31 }
  0xc9   :  { %1249 = vmatpush.bf16.msrb.mxu2 %v2139_v44  ;;  %1190 = vmatmul.bf16.vlgmr.msra.gmra.mxu1 %v2964_v58  ;;  %v2557_v44 = vld [vmem:[#allocation5 + $0x2ec] sm:$0xf]  ;;  %v1820_v41 = vld [vmem:[#allocation5 + $0x38] sm:$0xf0] }
  0xca   :  { %1262 = vmatpush.bf16.msrb.mxu3 %v2267_v45  ;;  %1225 = vmatpush.bf16.msrb.mxu0 %v1851_v48  ;;  %v2172_v45 = vld [vmem:[#allocation5 + $0x2f8] sm:$0xf0]  ;;  %v2589_v48 = vld [vmem:[#allocation5 + $0x3ec] sm:$0xf] }
  0xcb   :  { %1238 = vmatpush.bf16.msrb.mxu1 %v1979_v49  ;;  %v2300_v49 = vld [vmem:[#allocation5 + $0x3f8] sm:$0xf0]  ;;  %v2545_v21 = vld [vmem:[#allocation5 + $0x28c] sm:$0xf] }
  0xcc   :  { %v2541_v34 = vld [vmem:[#allocation5 + $0x26c] sm:$0xf]  ;;  %v1948_v43 = vld [vmem:[#allocation5 + $0x138] sm:$0xf0] }
  0xcd   :  { %1250 = vmatpush.bf16.msrb.mxu2 %v2123_v57  ;;  %v2175_v57 = vor.u32 %v2557_v44, %v2172_v45  ;;  %v2573_v38 = vld [vmem:[#allocation5 + $0x36c] sm:$0xf]  ;;  %v2188_v8 = vld [vmem:[#allocation5 + $0x318] sm:$0xf0] }
  0xce   :  { %1263 = vmatpush.bf16.msrb.mxu3 %v2251_v59  ;;  %1226 = vmatpush.bf16.msrb.mxu0 %v1835_v62  ;;  %v2303_v59 = vor.u32 %v2589_v48, %v2300_v49  ;;  %v1887_v62 = vor.u32 %v2485_v50, %v1884_v52  ;;  %v2469_v40 = vld [vmem:[#allocation5 + $0x2c] sm:$0xf]  ;;  %v2593_v14 = vld [vmem:[%s3096_s5 + $0x8] sm:$0xff]  ;;  %v2600_v30 = vld [vmem:[%s3096_s5 + $0x40] sm:$0xff] }
  0xcf   :  { %1239 = vmatpush.bf16.msrb.mxu1 %v1963_v63  ;;  %v2015_v63 = vor.u32 %v2517_v54, %v2012_v55  ;;  %v2501_v42 = vld [vmem:[#allocation5 + $0x12c] sm:$0xf]  ;;  %v1823_v48 = vor.u32 %v2469_v40, %v1820_v41  ;;  %v1804_v54 = vld [vmem:[#allocation5 + $0x18] sm:$0xf0] }
  0xd0   :  { %1203 = vmatmul.bf16.vlgmr.msra.gmra.mxu2 %v2968_v17  ;;  %v1951_v49 = vor.u32 %v2501_v42, %v1948_v43  ;;  %v2569_v50 = vld [vmem:[#allocation5 + $0x34c] sm:$0xf]  ;;  %v2605_v15 = vld [vmem:[%s3096_s5 + $0x68] sm:$0xff]  ;;  %v2612_v31 = vld [vmem:[%s3096_s5 + $0xa0] sm:$0xff] }
  0xd1   :  { %1216 = vmatmul.bf16.vlgmr.msra.gmra.mxu3 %v2970_v23  ;;  %1251 = vmatpush.bf16.msrb.mxu2 %v2107_v6  ;;  %v2159_v6 = vor.u32 %v2553_v60, %v2156_v61  ;;  %v2465_v52 = vld [vmem:[#allocation5 + $0xc] sm:$0xf]  ;;  %v2076_v61 = vld [vmem:[#allocation5 + $0x238] sm:$0xf0] }
  0xd2   :  { %1264 = vmatpush.bf16.msrb.mxu3 %v2235_v7  ;;  %1227 = vmatpush.bf16.msrb.mxu0 %v1819_v11  ;;  %v2287_v7 = vor.u32 %v2585_v0, %v2284_v1  ;;  %v1999_v11 = vor.u32 %v2513_v4, %v1996_v5  ;;  %v2497_v55 = vld [vmem:[#allocation5 + $0x10c] sm:$0xf]  ;;  %v2204_v1 = vld [vmem:[#allocation5 + $0x338] sm:$0xf0] }
  0xd3   :  { %1240 = vmatpush.bf16.msrb.mxu1 %v1947_v12  ;;  %v2581_v12 = vld [vmem:[#allocation5 + $0x3ac] sm:$0xf] }
  0xd4   :  { %v2533_v60 = vld [vmem:[#allocation5 + $0x22c] sm:$0xf] }
  0xd5   :  { %1252 = vmatpush.bf16.msrb.mxu2 %v2091_v20  ;;  %v2271_v20 = vor.u32 %v2581_v12, %v2268_v13  ;;  %v2565_v0 = vld [vmem:[#allocation5 + $0x32c] sm:$0xf]  ;;  %v2079_v3 = vor.u32 %v2533_v60, %v2076_v61  ;;  %v2597_v12 = vld [vmem:[%s3096_s5 + $0x28] sm:$0xff]  ;;  %v2596_v13 = vld [vmem:[%s3096_s5 + $0x20] sm:$0xff] }
  0xd6   :  { %1265 = vmatpush.bf16.msrb.mxu3 %v2219_v25  ;;  %1228 = vmatpush.bf16.msrb.mxu0 %v1803_v28  ;;  %v1983_v25 = vor.u32 %v2509_v16, %v1980_v18  ;;  %v2473_v28 = vld [vmem:[#allocation5 + $0x4c] sm:$0xf]  ;;  %v2207_v4 = vor.u32 %v2565_v0, %v2204_v1  ;;  %v2592_v16 = vld [vmem:[%s3096_s5] sm:$0xff]  ;;  %v2621_v61 = vld [vmem:[%s3096_s5 + $0xe8] sm:$0xff] }
  0xd7   :  { %1241 = vmatpush.bf16.msrb.mxu1 %v1931_v29  ;;  %v1836_v29 = vld [vmem:[#allocation5 + $0x58] sm:$0xf0]  ;;  %v2599_v2 = vld [vmem:[%s3096_s5 + $0x38] sm:$0xff]  ;;  %v2598_v9 = vld [vmem:[%s3096_s5 + $0x30] sm:$0xff] }
  0xd8   :  { %v1839_v36 = vor.u32 %v2473_v28, %v1836_v29  ;;  %v2529_v5 = vld [vmem:[#allocation5 + $0x20c] sm:$0xf]  ;;  %v2604_v18 = vld [vmem:[%s3096_s5 + $0x60] sm:$0xff]  ;;  %v2613_v28 = vld [vmem:[%s3096_s5 + $0xa8] sm:$0xff] }
  0xd9   :  { %1253 = vmatpush.bf16.msrb.mxu2 %v2075_v35  ;;  %1229 = vmatmul.bf16.vlgmr.msrb.gmra.mxu0 %v2962_v53  ;;  %v2108_v35 = vld [vmem:[#allocation5 + $0x278] sm:$0xf0] }
  0xda   :  { %1273 = vmatpush.bf16.msra.mxu0 %v1919_v32  ;;  %1266 = vmatpush.bf16.msrb.mxu3 %v2203_v39  ;;  %v2127_v32 = vor.u32 %v2545_v21, %v2124_v22  ;;  %v2236_v39 = vld [vmem:[#allocation5 + $0x378] sm:$0xf0]  ;;  %v2111_v44 = vor.u32 %v2541_v34, %v2108_v35  ;;  %v2602_v21 = vld [vmem:[%s3096_s5 + $0x50] sm:$0xff]  ;;  %v2611_v35 = vld [vmem:[%s3096_s5 + $0x98] sm:$0xff] }
  0xdb   :  { %1286 = vmatpush.bf16.msra.mxu1 %v2047_v33  ;;  %v2255_v33 = vor.u32 %v2577_v26, %v2252_v27  ;;  %v2239_v45 = vor.u32 %v2573_v38, %v2236_v39  ;;  %v2614_v22 = vld [vmem:[%s3096_s5 + $0xb0] sm:$0xff]  ;;  %v2601_v27 = vld [vmem:[%s3096_s5 + $0x48] sm:$0xff] }
  0xdc   :  { %1242 = vmatmul.bf16.vlgmr.msrb.gmra.mxu1 %v2964_v58  ;;  %v2610_v38 = vld [vmem:[%s3096_s5 + $0x90] sm:$0xff] }
  0xdd   :  { %1254 = vmatpush.bf16.msrb.mxu2 %v2059_v51  ;;  %v2220_v51 = vld [vmem:[#allocation5 + $0x358] sm:$0xf0] }
  0xde   :  { %1274 = vmatpush.bf16.msra.mxu0 %v1903_v46  ;;  %1267 = vmatpush.bf16.msrb.mxu3 %v2187_v56  ;;  %v2537_v46 = vld [vmem:[#allocation5 + $0x24c] sm:$0xf]  ;;  %v1932_v56 = vld [vmem:[#allocation5 + $0x118] sm:$0xf0] }
  0xdf   :  { %1287 = vmatpush.bf16.msra.mxu1 %v2031_v47  ;;  %v2092_v47 = vld [vmem:[#allocation5 + $0x258] sm:$0xf0] }
  0xe0   :  { %1255 = vmatmul.bf16.vlgmr.msrb.gmra.mxu2 %v2968_v17 }
  0xe1   :  { %1299 = vmatpush.bf16.msra.mxu2 %v2175_v57  ;;  %1268 = vmatmul.bf16.vlgmr.msrb.gmra.mxu3 %v2970_v23  ;;  %v2095_v57 = vor.u32 %v2537_v46, %v2092_v47 }
  0xe2   :  { %1312 = vmatpush.bf16.msra.mxu3 %v2303_v59  ;;  %1275 = vmatpush.bf16.msra.mxu0 %v1887_v62  ;;  %v2223_v59 = vor.u32 %v2569_v50, %v2220_v51  ;;  %v1807_v62 = vor.u32 %v2465_v52, %v1804_v54  ;;  %v2623_v50 = vld [vmem:[%s3096_s5 + $0xf8] sm:$0xff] }
  0xe3   :  { %1288 = vmatpush.bf16.msra.mxu1 %v2015_v63  ;;  %v1935_v63 = vor.u32 %v2497_v55, %v1932_v56 }
  0xe5   :  { %1300 = vmatpush.bf16.msra.mxu2 %v2159_v6  ;;  %v2060_v6 = vld [vmem:[#allocation5 + $0x218] sm:$0xf0] }
  0xe6   :  { %1313 = vmatpush.bf16.msra.mxu3 %v2287_v7  ;;  %1276 = vmatpush.bf16.msra.mxu0 %v1871_v10  ;;  %v2561_v7 = vld [vmem:[#allocation5 + $0x30c] sm:$0xf]  ;;  %v2063_v10 = vor.u32 %v2529_v5, %v2060_v6 }
  0xe7   :  { %1289 = vmatpush.bf16.msra.mxu1 %v1999_v11  ;;  %v2191_v11 = vor.u32 %v2561_v7, %v2188_v8  ;;  %v2619_v8 = vld [vmem:[%s3096_s5 + $0xd8] sm:$0xff] }
  0xe9   :  { %1301 = vmatpush.bf16.msra.mxu2 %v2143_v19  ;;  %v2603_v19 = vld [vmem:[%s3096_s5 + $0x58] sm:$0xff] }
  0xea   :  { %1314 = vmatpush.bf16.msra.mxu3 %v2271_v20  ;;  %1277 = vmatpush.bf16.msra.mxu0 %v1855_v24  ;;  %v2615_v20 = vld [vmem:[%s3096_s5 + $0xb8] sm:$0xff] }
  0xeb   :  { %1290 = vmatpush.bf16.msra.mxu1 %v1983_v25  ;;  %v3034_v25 = vld [vmem:[#allocation7] sm:$0xf] }
  0xec   :  { %v469_v29 = vperm.slane %v3034_v25, 0  ;;  %v470_v47 = vperm.slane %v3034_v25, 1  ;;  %v471_v6 = vperm.slane %v3034_v25, 2 }
  0xed   :  { %1302 = vmatpush.bf16.msra.mxu2 %v2127_v32 }
  0xee   :  { %1315 = vmatpush.bf16.msra.mxu3 %v2255_v33  ;;  %1278 = vmatpush.bf16.msra.mxu0 %v1839_v36 }
  0xef   :  { %1291 = vmatpush.bf16.msra.mxu1 %v1967_v37 }
  0xf1   :  { %1303 = vmatpush.bf16.msra.mxu2 %v2111_v44  ;;  %v2609_v44 = vld [vmem:[%s3096_s5 + $0x88] sm:$0xff] }
  0xf2   :  { %1316 = vmatpush.bf16.msra.mxu3 %v2239_v45  ;;  %1279 = vmatpush.bf16.msra.mxu0 %v1823_v48 }
  0xf3   :  { %1292 = vmatpush.bf16.msra.mxu1 %v1951_v49  ;;  %v2608_v49 = vld [vmem:[%s3096_s5 + $0x80] sm:$0xff] }
  0xf5   :  { %1304 = vmatpush.bf16.msra.mxu2 %v2095_v57  ;;  %v2622_v57 = vld [vmem:[%s3096_s5 + $0xf0] sm:$0xff] }
  0xf6   :  { %1317 = vmatpush.bf16.msra.mxu3 %v2223_v59  ;;  %1280 = vmatpush.bf16.msra.mxu0 %v1807_v62 }
  0xf7   :  { %1293 = vmatpush.bf16.msra.mxu1 %v1935_v63 }
  0xf9   :  { %1305 = vmatpush.bf16.msra.mxu2 %v2079_v3  ;;  %1281 = vmatmul.bf16.vlgmr.msra.gmra.mxu0 %v2962_v53  ;;  %v2595_v53 = vld [vmem:[%s3096_s5 + $0x18] sm:$0xff] }
  0xfa   :  { %1597 = vmatpush.bf16.msrb.mxu0 %v2599_v2  ;;  %1318 = vmatpush.bf16.msra.mxu3 %v2207_v4  ;;  %v2620_v2 = vld [vmem:[%s3096_s5 + $0xe0] sm:$0xff] }
  0xfb   :  { %1294 = vmatmul.bf16.vlgmr.msra.gmra.mxu1 %v2964_v58  ;;  %v2607_v58 = vld [vmem:[%s3096_s5 + $0x78] sm:$0xff] }
  0xfc   :  { %1610 = vmatpush.bf16.msrb.mxu1 %v2607_v58 }
  0xfd   :  { %1306 = vmatpush.bf16.msra.mxu2 %v2063_v10 }
  0xfe   :  { %1598 = vmatpush.bf16.msrb.mxu0 %v2598_v9  ;;  %1319 = vmatpush.bf16.msra.mxu3 %v2191_v11 }
 0x100   :  { %1307 = vmatmul.bf16.vlgmr.msra.gmra.mxu2 %v2968_v17  ;;  %v2594_v17 = vld [vmem:[%s3096_s5 + $0x10] sm:$0xff] }
 0x101   :  { %1320 = vmatmul.bf16.vlgmr.msra.gmra.mxu3 %v2970_v23  ;;  %v2606_v23 = vld [vmem:[%s3096_s5 + $0x70] sm:$0xff]  ;;  %1623 = vmatpush.bf16.msrb.mxu2 %v2615_v20 }
 0x102   :  { %1599 = vmatpush.bf16.msrb.mxu0 %v2597_v12  ;;  %1611 = vmatpush.bf16.msrb.mxu1 %v2606_v23 }
 0x103   :  { %1636 = vmatpush.bf16.msrb.mxu3 %v2623_v50 }
 0x105   :  { %1624 = vmatpush.bf16.msrb.mxu2 %v2614_v22 }
 0x106   :  { %1600 = vmatpush.bf16.msrb.mxu0 %v2596_v13  ;;  %1612 = vmatpush.bf16.msrb.mxu1 %v2605_v15  ;;  %v2618_v13 = vld [vmem:[%s3096_s5 + $0xd0] sm:$0xff] }
 0x107   :  { %1637 = vmatpush.bf16.msrb.mxu3 %v2622_v57 }
 0x109   :  { %1625 = vmatpush.bf16.msrb.mxu2 %v2613_v28  ;;  %v472_v28 = vperm.slane %v3034_v25, 3 }
 0x10a   :  { %1601 = vmatpush.bf16.msrb.mxu0 %v2595_v53  ;;  %1613 = vmatpush.bf16.msrb.mxu1 %v2604_v18  ;;  %v2616_v18 = vld [vmem:[%s3096_s5 + $0xc0] sm:$0xff] }
 0x10b   :  { %1638 = vmatpush.bf16.msrb.mxu3 %v2621_v61 }
 0x10d   :  { %1626 = vmatpush.bf16.msrb.mxu2 %v2612_v31 }
 0x10e   :  { %1602 = vmatpush.bf16.msrb.mxu0 %v2594_v17  ;;  %1614 = vmatpush.bf16.msrb.mxu1 %v2603_v19  ;;  %v2617_v17 = vld [vmem:[%s3096_s5 + $0xc8] sm:$0xff] }
 0x10f   :  { %1639 = vmatpush.bf16.msrb.mxu3 %v2620_v2 }
 0x111   :  { %1627 = vmatpush.bf16.msrb.mxu2 %v2611_v35 }
 0x112   :  { %1603 = vmatpush.bf16.msrb.mxu0 %v2593_v14  ;;  %1615 = vmatpush.bf16.msrb.mxu1 %v2602_v21 }
 0x113   :  { %1640 = vmatpush.bf16.msrb.mxu3 %v2619_v8 }
 0x115   :  { %1628 = vmatpush.bf16.msrb.mxu2 %v2610_v38 }
 0x116   :  { %1604 = vmatpush.bf16.msrb.mxu0 %v2592_v16  ;;  %1616 = vmatpush.bf16.msrb.mxu1 %v2601_v27 }
 0x117   :  { %1641 = vmatpush.bf16.msrb.mxu3 %v2618_v13 }
 0x119   :  { %1629 = vmatpush.bf16.msrb.mxu2 %v2609_v44 }
 0x11a   :  { %1617 = vmatpush.bf16.msrb.mxu1 %v2600_v30 }
 0x11b   :  { %1642 = vmatpush.bf16.msrb.mxu3 %v2617_v17 }
 0x11d   :  { %1630 = vmatpush.bf16.msrb.mxu2 %v2608_v49 }
 0x11f   :  { %1643 = vmatpush.bf16.msrb.mxu3 %v2616_v18 }
 0x135   :  { %v1126_v24 = vpop.f32.mrf.mxu0 }
 0x136   :  { %v1139_v26 = vpop.f32.mrf.mxu1  ;;  %v1127_v32 = vadd.f32 %v1126_v24, %v469_v29 }
 0x138   :  { %v1140_v36 = vadd.f32 %v1139_v26, %v1127_v32 }
 0x13d   :  { %v1128_v33 = vpop.f32.mrf.mxu0 }
 0x13e   :  { %v1141_v34 = vpop.f32.mrf.mxu1 }
 0x143   :  { %v1152_v37 = vpop.f32.mrf.mxu2 }
 0x144   :  { %v1153_v39 = vadd.f32 %v1152_v37, %v1140_v36  ;;  %v1165_v40 = vpop.f32.mrf.mxu3 }
 0x145   :  { %v1178_v42 = vpop.f32.mrf.mxu0 }
 0x146   :  { %v1166_v41 = vadd.f32 %v1165_v40, %v1153_v39  ;;  %v1191_v43 = vpop.f32.mrf.mxu1  ;;  %v1179_v54 = vadd.f32 %v1178_v42, %v470_v47  ;;  %v2629_v47 = vld [vmem:[#allocation2] ss:$0 sm:$0xff] }
 0x148   :  { %v1325_v45 = vmul.f32 0.01, %v1166_v41  ;;  %v1192_v59 = vadd.f32 %v1191_v43, %v1179_v54 }
 0x14a   :  { %v1329_v46 = vmax.f32 %v1166_v41, %v1325_v45 }
 0x14b   :  { %v1154_v48 = vpop.f32.mrf.mxu2 }
 0x14c   :  { %v1333_v51 = vpack.c.bf16 %v1329_v46, %v1329_v46  ;;  %v1167_v52 = vpop.f32.mrf.mxu3 }
 0x14d   :  { %v1180_v55 = vpop.f32.mrf.mxu0 }
 0x14e   :  { %1605 = vmatmul.bf16.vlgmr.msrb.gmra.mxu0 %v1333_v51  ;;  %v1193_v56 = vpop.f32.mrf.mxu1 }
 0x153   :  { %v1204_v60 = vpop.f32.mrf.mxu2 }
 0x154   :  { %v1205_v62 = vadd.f32 %v1204_v60, %v1192_v59  ;;  %v1217_v63 = vpop.f32.mrf.mxu3 }
 0x156   :  { %v1218_v0 = vadd.f32 %v1217_v63, %v1205_v62  ;;  %v1230_v1 = vpop.f32.mrf.mxu0 }
 0x157   :  { %v1231_v11 = vadd.f32 %v1230_v1, %v471_v6 }
 0x158   :  { %v1326_v3 = vmul.f32 0.01, %v1218_v0 }
 0x159   :  { %v1243_v4 = vpop.f32.mrf.mxu1 }
 0x15a   :  { %v1330_v5 = vmax.f32 %v1218_v0, %v1326_v3  ;;  %v1244_v58 = vadd.f32 %v1243_v4, %v1231_v11 }
 0x15b   :  { %v1206_v7 = vpop.f32.mrf.mxu2 }
 0x15c   :  { %v1334_v9 = vpack.c.bf16 %v1330_v5, %v1330_v5  ;;  %v1219_v10 = vpop.f32.mrf.mxu3 }
 0x15e   :  { %1618 = vmatmul.bf16.vlgmr.msrb.gmra.mxu1 %v1334_v9  ;;  %v1232_v12 = vpop.f32.mrf.mxu0 }
 0x161   :  { %v1245_v53 = vpop.f32.mrf.mxu1 }
 0x163   :  { %v1256_v23 = vpop.f32.mrf.mxu2 }
 0x164   :  { %v1269_v14 = vpop.f32.mrf.mxu3  ;;  %v1257_v15 = vadd.f32 %v1256_v23, %v1244_v58 }
 0x166   :  { %v1270_v16 = vadd.f32 %v1269_v14, %v1257_v15 }
 0x168   :  { %v1327_v19 = vmul.f32 0.01, %v1270_v16 }
 0x16a   :  { %v1331_v20 = vmax.f32 %v1270_v16, %v1327_v19 }
 0x16b   :  { %v1258_v21 = vpop.f32.mrf.mxu2 }
 0x16c   :  { %v1271_v22 = vpop.f32.mrf.mxu3  ;;  %v1335_v24 = vpack.c.bf16 %v1331_v20, %v1331_v20 }
 0x16e   :  { %1631 = vmatmul.bf16.vlgmr.msrb.gmra.mxu2 %v1335_v24 }
 0x176   :  { %v1282_v26 = vpop.f32.mrf.mxu0 }
 0x177   :  { %v1283_v29 = vadd.f32 %v1282_v26, %v472_v28 }
 0x178   :  { %v1295_v27 = vpop.f32.mrf.mxu1 }
 0x179   :  { %v1296_v32 = vadd.f32 %v1295_v27, %v1283_v29 }
 0x17e   :  { %v1284_v30 = vpop.f32.mrf.mxu0 }
 0x180   :  { %v1297_v31 = vpop.f32.mrf.mxu1 }
 0x183   :  { %v1308_v33 = vpop.f32.mrf.mxu2 }
 0x184   :  { %v1309_v34 = vadd.f32 %v1308_v33, %v1296_v32  ;;  %v1321_v35 = vpop.f32.mrf.mxu3 }
 0x186   :  { %v1322_v36 = vadd.f32 %v1321_v35, %v1309_v34 }
 0x188   :  { %v1328_v37 = vmul.f32 0.01, %v1322_v36 }
 0x18a   :  { %v1332_v38 = vmax.f32 %v1322_v36, %v1328_v37 }
 0x18b   :  { %v1310_v39 = vpop.f32.mrf.mxu2 }
 0x18c   :  { %v1336_v40 = vpack.c.bf16 %v1332_v38, %v1332_v38  ;;  %v1323_v41 = vpop.f32.mrf.mxu3 }
 0x18e   :  { %1644 = vmatmul.bf16.vlgmr.msrb.gmra.mxu3 %v1336_v40 }
 0x1cb   :  { %v1606_v42 = vpop.f32.mrf.mxu0 }
 0x1cc   :  { %v1607_v48 = vadd.f32 %v2629_v47, %v1606_v42 }
 0x1d3   :  { %v1608_v43 = vpop.f32.mrf.mxu0 }
 0x1db   :  { %v1619_v44 = vpop.f32.mrf.mxu1 }
 0x1dc   :  { %v1620_v49 = vadd.f32 %v1619_v44, %v1607_v48 }
 0x1e3   :  { %v1621_v45 = vpop.f32.mrf.mxu1 }
 0x1f1   :  { %v1632_v46 = vpop.f32.mrf.mxu2 }
 0x1f2   :  { %v1633_v50 = vadd.f32 %v1632_v46, %v1620_v49 }
 0x1f9   :  { %v1634_v25 = vpop.f32.mrf.mxu2 }
 0x211   :  { %v1645_v51 = vpop.f32.mrf.mxu3 }
 0x212   :  { %v1646_v52 = vadd.f32 %v1645_v51, %v1633_v50 }
 0x214   :  { %v1649_v54 = vsub.f32 0.0, %v1646_v52 }
 0x216   :  { %v1650_v55 = vmul.f32 1.442695, %v1649_v54 }
 0x218   :  { %2630 = vpow2.f32 %v1650_v55 }
 0x219   :  { %v1647_v56 = vpop.f32.mrf.mxu3 }
 0x21e   :  { %v2631_v57 = vpop.eup %2630 }
 0x21f   :  { %v1652_v59 = vadd.f32 1.0, %v2631_v57 }
 0x221   :  { %2632 = vrcp.f32 %v1652_v59 }
 0x227   :  { %v2633_v60 = vpop.eup %2632 }
 0x228   :  { %v1654_v61 = vmax.f32 %v2633_v60, 0.0001 }
 0x22a   :  { %v1655_v62 = vmin.f32 %v1654_v61, 0.9999 }
 0x22c   :  { %1657 = vst.msk [vmem:[%s3098_s7] sm:$0xff] %vm1656_vm0, %v1655_v62 }
 0x22d   :  { %1662 = vsyncpa [#allocation4], 1 }
 0x22e   :  { %1663 = vsyncpa [#allocation6], 1 }

</bundles_post_ra>
